<compile_context>
chip_gen: v7x
topology: tpu7x:2x2x1
jax: 0.10.0
libtpu: 0.0.40
codegen_flags: <defaults>
</compile_context>

<pallas_src>
import functools

import numpy as np
import jax
import jax.numpy as jnp
from jax.experimental import pallas as pl
from jax.experimental.pallas import tpu as pltpu


COMPUTE_DTYPE = jnp.bfloat16          # MXU operand dtype / intermediate dtype
_VMEM_LIMIT_BYTES = 32 * 1024 * 1024  # comfortable on v5e/v6e (128 MiB) and v7x (64 MiB)


# ----------------------------------------------------------------------------
# Lane-dense Pallas MXU matmul:  (Cout, K) @ (B, K, N) -> (B, Cout, N)
# ----------------------------------------------------------------------------
def _mm_kernel(w_ref, a_ref, o_ref):
    o_ref[0] = jnp.dot(w_ref[...], a_ref[0],
                       preferred_element_type=jnp.float32).astype(o_ref.dtype)


def _pick_lane_tile(n):
    """Largest nice lane tile that gives >= 2 grid steps along N, else full N."""
    for cand in (1024, 512, 256, 128):
        if n % cand == 0 and n // cand >= 2:
            return cand
    return n


def pallas_nt_matmul(w, a, out_dtype):
    """w: (Cout, K), a: (B, K, N) -> (B, Cout, N) in out_dtype, f32 accumulation."""
    Cout, K = w.shape
    B, K2, N = a.shape
    assert K == K2
    w = w.astype(COMPUTE_DTYPE)
    a = a.astype(COMPUTE_DTYPE)
    tn = _pick_lane_tile(N)

    return pl.pallas_call(
        _mm_kernel,
        out_shape=jax.ShapeDtypeStruct((B, Cout, N), out_dtype),
        grid=(B, N // tn),
        in_specs=[
            pl.BlockSpec((Cout, K), lambda b, j: (0, 0)),       # weights resident
            pl.BlockSpec((1, K, tn), lambda b, j: (b, 0, j)),   # K full extent
        ],
        out_specs=pl.BlockSpec((1, Cout, tn), lambda b, j: (b, 0, j)),
        compiler_params=pltpu.CompilerParams(
            dimension_semantics=("parallel", "parallel"),
            vmem_limit_bytes=_VMEM_LIMIT_BYTES),
    )(w, a)


# ----------------------------------------------------------------------------
# Fused GroupNorm + activation (dense (C, HW) tile, one-pass f32 statistics)
# ----------------------------------------------------------------------------
def _gn_act_kernel(x_ref, g_ref, b_ref, o_ref, *, groups, eps, act):
    x = x_ref[0].astype(jnp.float32)                     # (C, HW)
    C, HW = x.shape
    cpg = C // groups
    s1 = jnp.sum(x, axis=1, keepdims=True)               # (C, 1)  lane reduce
    s2 = jnp.sum(x * x, axis=1, keepdims=True)           # (C, 1)
    if cpg > 1:                                          # combine channels in a group
        gs1 = jnp.sum(s1.reshape(groups, cpg), axis=1, keepdims=True)
        gs2 = jnp.sum(s2.reshape(groups, cpg), axis=1, keepdims=True)
        s1 = jnp.broadcast_to(gs1, (groups, cpg)).reshape(C, 1)
        s2 = jnp.broadcast_to(gs2, (groups, cpg)).reshape(C, 1)
    cnt = float(cpg * HW)
    mu = s1 / cnt
    var = jnp.maximum(s2 / cnt - mu * mu, 0.0)           # one-pass, kept in f32
    inv = jax.lax.rsqrt(var + eps)                       # (C, 1)
    y = (x - mu) * (inv * g_ref[...]) + b_ref[...]       # per-channel affine
    if act == "relu":
        y = jnp.maximum(y, 0.0)
    else:  # leaky_relu(0.1)
        y = jnp.where(y >= 0, y, 0.1 * y)
    o_ref[0] = y.astype(o_ref.dtype)


def group_norm_act(x, gamma, beta, num_groups, act, eps=1e-5, out_dtype=jnp.float32):
    B, C, H, W = x.shape
    HW = H * W
    xr = x.reshape(B, C, HW)
    g2 = gamma.astype(jnp.float32).reshape(C, 1)
    b2 = beta.astype(jnp.float32).reshape(C, 1)
    out = pl.pallas_call(
        functools.partial(_gn_act_kernel, groups=num_groups, eps=eps, act=act),
        out_shape=jax.ShapeDtypeStruct((B, C, HW), out_dtype),
        grid=(B,),
        in_specs=[pl.BlockSpec((1, C, HW), lambda i: (i, 0, 0)),
                  pl.BlockSpec((C, 1), lambda i: (0, 0)),
                  pl.BlockSpec((C, 1), lambda i: (0, 0))],
        out_specs=pl.BlockSpec((1, C, HW), lambda i: (i, 0, 0)),
        compiler_params=pltpu.CompilerParams(
            dimension_semantics=("parallel",),
            vmem_limit_bytes=_VMEM_LIMIT_BYTES),
    )(xr, g2, b2)
    return out.reshape(B, C, H, W)


# ----------------------------------------------------------------------------
# Convolutions: bf16 im2col in (B, K, Ho*Wo) layout + lane-dense Pallas matmul
# ----------------------------------------------------------------------------
def conv2d_mm(x, w, padding, out_dtype):
    """x: (B,Cin,H,W), w: (Cout,Cin,KH,KW) cross-correlation (PyTorch Conv2d), no bias,
    stride 1."""
    B, Cin, H, W = x.shape
    Cout, _, KH, KW = w.shape
    p = padding
    xp = jnp.pad(x.astype(COMPUTE_DTYPE), ((0, 0), (0, 0), (p, p), (p, p)))
    Ho = H + 2 * p - KH + 1
    Wo = W + 2 * p - KW + 1
    # im2col directly in (B, K, Ho*Wo) with K ordered (cin, kh, kw) -> matches
    # the natural weight flatten below; single materialization, bf16.
    taps = [xp[:, :, kh:kh + Ho, kw:kw + Wo]
            for kh in range(KH) for kw in range(KW)]          # each (B, Cin, Ho, Wo)
    a = jnp.stack(taps, axis=2).reshape(B, Cin * KH * KW, Ho * Wo)
    wm = w.reshape(Cout, Cin * KH * KW)                       # (Cout, K), same K order
    out = pallas_nt_matmul(wm, a, out_dtype)                  # (B, Cout, Ho*Wo)
    return out.reshape(B, Cout, Ho, Wo)


def conv_transpose2d_4x4_s2_p1(x, w, out_dtype=COMPUTE_DTYPE):
    """PyTorch ConvTranspose2d(in,out,4,stride=2,padding=1,bias=False).

    Sub-pixel decomposition: each output parity class (even/odd row x even/odd
    col) is a 2x2 correlation of the un-dilated input with a flipped 2x2
    sub-kernel.  All four share one im2col over the 1-padded input and one
    matmul with 4*Cout output rows, then the four parity planes are interleaved.
    w: (Cin, Cout, 4, 4).
    """
    B, Cin, H, W = x.shape
    Cout = w.shape[1]
    subs = []
    # parity order: (even_h, even_w), (even_h, odd_w), (odd_h, even_w), (odd_h, odd_w)
    for kh0, kw0 in ((1, 1), (1, 0), (0, 1), (0, 0)):
        k = jnp.flip(w[:, :, kh0::2, kw0::2], axis=(2, 3))     # (Cin, Cout, 2, 2)
        subs.append(jnp.transpose(k, (1, 0, 2, 3)))            # (Cout, Cin, 2, 2)
    w_comb = jnp.concatenate(subs, axis=0)                     # (4*Cout, Cin, 2, 2)

    y = conv2d_mm(x, w_comb, padding=1, out_dtype=out_dtype)   # (B, 4*Cout, H+1, W+1) bf16

    # TODO(synk): fuse this parity interleave (+ GN1/ReLU) into a Pallas epilogue;
    # for now it is a small XLA shuffle on bf16 data.
    ee = y[:, 0 * Cout:1 * Cout, :H, :W]
    eo = y[:, 1 * Cout:2 * Cout, :H, 1:]
    oe = y[:, 2 * Cout:3 * Cout, 1:, :W]
    oo = y[:, 3 * Cout:4 * Cout, 1:, 1:]
    row0 = jnp.stack([ee, eo], axis=-1)                        # (B,C,H,W,2)
    row1 = jnp.stack([oe, oo], axis=-1)
    out = jnp.stack([row0, row1], axis=3)                      # (B,C,H,2,W,2)
    return out.reshape(B, Cout, 2 * H, 2 * W)


# ----------------------------------------------------------------------------
# DecoderBlock forward
# ----------------------------------------------------------------------------
def decoder_block_forward(params, x, num_groups=16):
    out_ch = params["up_w"].shape[1]
    g = min(num_groups, out_ch)
    y = conv_transpose2d_4x4_s2_p1(x, params["up_w"], out_dtype=COMPUTE_DTYPE)
    y = group_norm_act(y, params["gn1_w"], params["gn1_b"], g,
                       act="relu", out_dtype=COMPUTE_DTYPE)
    y = conv2d_mm(y, params["conv_w"], padding=1, out_dtype=COMPUTE_DTYPE)
    y = group_norm_act(y, params["gn2_w"], params["gn2_b"], g,
                       act="leaky_relu", out_dtype=jnp.float32)
    return y


# ----------------------------------------------------------------------------
# Plain-JAX reference (lax convs, mirroring the bf16-operand / bf16-intermediate
# / f32-accumulate scheme so the tolerance check is tight and honest)
# ----------------------------------------------------------------------------
def _ref_group_norm(x, gamma, beta, G, eps=1e-5):
    B, C, H, W = x.shape
    xg = x.astype(jnp.float32).reshape(B, G, C // G, H, W)
    mu = xg.mean(axis=(2, 3, 4), keepdims=True)
    var = ((xg - mu) ** 2).mean(axis=(2, 3, 4), keepdims=True)
    xn = ((xg - mu) / jnp.sqrt(var + eps)).reshape(B, C, H, W)
    return xn * gamma.reshape(1, C, 1, 1) + beta.reshape(1, C, 1, 1)


def reference_decoder_block(params, x, num_groups=16):
    cd = COMPUTE_DTYPE
    out_ch = params["up_w"].shape[1]
    G = min(num_groups, out_ch)
    dn = ("NCHW", "OIHW", "NCHW")
    # ConvTranspose2d(4,2,1) == lhs-dilated conv with the flipped kernel, pad k-1-p = 2.
    w_up = jnp.flip(params["up_w"], (2, 3)).transpose(1, 0, 2, 3)   # (Cout, Cin, 4, 4)
    y = jax.lax.conv_general_dilated(
        x.astype(cd), w_up.astype(cd), window_strides=(1, 1),
        padding=[(2, 2), (2, 2)], lhs_dilation=(2, 2),
        dimension_numbers=dn, preferred_element_type=jnp.float32).astype(cd)
    y = _ref_group_norm(y, params["gn1_w"], params["gn1_b"], G)
    y = jnp.maximum(y, 0.0).astype(cd)
    y = jax.lax.conv_general_dilated(
        y, params["conv_w"].astype(cd), window_strides=(1, 1),
        padding=[(1, 1), (1, 1)],
        dimension_numbers=dn, preferred_element_type=jnp.float32).astype(cd)
    y = _ref_group_norm(y, params["gn2_w"], params["gn2_b"], G)
    return jnp.where(y >= 0, y, 0.1 * y)


# ----------------------------------------------------------------------------
if __name__ == "__main__":
    root = jax.random.PRNGKey(0)
    kx, ku, kc, kg1w, kg1b, kg2w, kg2b = jax.random.split(root, 7)

    # DecoderBlock(in_ch=32, out_ch=16) as used by the parent model (dec1 = 2*BC -> BC).
    B, in_ch, out_ch, H, W = 2, 32, 16, 16, 16
    x = jax.random.normal(kx, (B, in_ch, H, W), jnp.float32)

    params = dict(
        up_w=jax.random.normal(ku, (in_ch, out_ch, 4, 4), jnp.float32) / np.sqrt(in_ch * 16),
        conv_w=jax.random.normal(kc, (out_ch, out_ch, 3, 3), jnp.float32) / np.sqrt(out_ch * 9),
        gn1_w=1.0 + 0.1 * jax.random.normal(kg1w, (out_ch,), jnp.float32),
        gn1_b=0.1 * jax.random.normal(kg1b, (out_ch,), jnp.float32),
        gn2_w=1.0 + 0.1 * jax.random.normal(kg2w, (out_ch,), jnp.float32),
        gn2_b=0.1 * jax.random.normal(kg2b, (out_ch,), jnp.float32),
    )

    fwd = jax.jit(decoder_block_forward)
    out = jax.block_until_ready(fwd(params, x))

    assert out.shape == (B, out_ch, 2 * H, 2 * W)
    assert out.dtype == jnp.float32
    assert bool(jnp.all(jnp.isfinite(out)))

    # Correctness check vs. a lax-based reference using the same bf16 operand /
    # bf16 intermediate / f32 accumulation scheme.
    ref = reference_decoder_block(params, x)
    np.testing.assert_allclose(np.asarray(out), np.asarray(ref), rtol=1e-2, atol=1e-2)

    print("KERNEL_OK")
</pallas_src>

<mosaic_0001>
module attributes {stable_mosaic.version = 11 : i64} {
  func.func @_mm_kernel(%arg0: i32, %arg1: i32, %arg2: memref<64x128xbf16, #tpu.memory_space<vmem>>, %arg3: memref<1x128x289xbf16, #tpu.memory_space<vmem>>, %arg4: memref<1x64x289xbf16, #tpu.memory_space<vmem>>) attributes {dimension_semantics = [#tpu.dimension_semantics<parallel>, #tpu.dimension_semantics<parallel>], iteration_bounds = array<i64: 2, 1>, scalar_prefetch = 0 : i64, scratch_operands = 0 : i64, tpu.core_type = #tpu.core_type<tc>, window_params = [{pipeline_mode = #tpu.pipeline_mode<synchronous>, transform_indices = @transform_0, window_bounds = array<i64: 64, 128>}, {transform_indices = @transform_1, window_bounds = array<i64: 1, 128, 289>}, {transform_indices = @transform_2, window_bounds = array<i64: 1, 64, 289>}]} {
    %c0 = arith.constant 0 : index
    %c0_0 = arith.constant 0 : index
    %0 = vector.load %arg2[%c0, %c0_0] : memref<64x128xbf16, #tpu.memory_space<vmem>>, vector<64x128xbf16>
    %c0_1 = arith.constant 0 : index
    %c0_2 = arith.constant 0 : index
    %c0_3 = arith.constant 0 : index
    %1 = vector.load %arg3[%c0_1, %c0_2, %c0_3] : memref<1x128x289xbf16, #tpu.memory_space<vmem>>, vector<1x128x289xbf16>
    %2 = vector.shape_cast %1 : vector<1x128x289xbf16> to vector<128x289xbf16>
    %cst = arith.constant dense<0.000000e+00> : vector<64x289xf32>
    %3 = tpu.matmul %0, %2, %cst {dimension_numbers = #tpu.dot_dimension_numbers<[1], [0], [0], [1], [0, 0, 1, 1], [], []>} : vector<64x128xbf16>, vector<128x289xbf16>, vector<64x289xf32> -> vector<64x289xf32>
    %4 = arith.truncf %3 : vector<64x289xf32> to vector<64x289xbf16>
    %c0_4 = arith.constant 0 : index
    %c0_5 = arith.constant 0 : index
    %c0_6 = arith.constant 0 : index
    %5 = vector.load %arg4[%c0_4, %c0_5, %c0_6] : memref<1x64x289xbf16, #tpu.memory_space<vmem>>, vector<1x64x289xbf16>
    %6 = vector.shape_cast %5 : vector<1x64x289xbf16> to vector<64x289xbf16>
    %7 = vector.shape_cast %4 : vector<64x289xbf16> to vector<1x64x289xbf16>
    tpu.vector_store %arg4[%c0_4, %c0_5, %c0_6], %7 {strides = array<i32>} : memref<1x64x289xbf16, #tpu.memory_space<vmem>>, vector<1x64x289xbf16>,
    return
  }
  func.func @transform_0(%arg0: i32, %arg1: i32) -> (i32, i32) {
    %c0_i32 = arith.constant 0 : i32
    %c0_i32_0 = arith.constant 0 : i32
    %c0_i32_1 = arith.constant 0 : i32
    return %c0_i32, %c0_i32_0 : i32, i32
  }
  func.func @transform_1(%arg0: i32, %arg1: i32) -> (i32, i32, i32) {
    %c0_i32 = arith.constant 0 : i32
    %c0_i32_0 = arith.constant 0 : i32
    return %arg0, %c0_i32, %arg1 : i32, i32, i32
  }
  func.func @transform_2(%arg0: i32, %arg1: i32) -> (i32, i32, i32) {
    %c0_i32 = arith.constant 0 : i32
    %c0_i32_0 = arith.constant 0 : i32
    return %arg0, %c0_i32, %arg1 : i32, i32, i32
  }
}

module attributes {stable_mosaic.version = 11 : i64} {
  func.func @_gn_act_kernel(%arg0: i32, %arg1: memref<1x16x1024xbf16, #tpu.memory_space<vmem>>, %arg2: memref<16x1xf32, #tpu.memory_space<vmem>>, %arg3: memref<16x1xf32, #tpu.memory_space<vmem>>, %arg4: memref<1x16x1024xbf16, #tpu.memory_space<vmem>>) attributes {dimension_semantics = [#tpu.dimension_semantics<parallel>], iteration_bounds = array<i64: 2>, scalar_prefetch = 0 : i64, scratch_operands = 0 : i64, tpu.core_type = #tpu.core_type<tc>, window_params = [{transform_indices = @transform_0, window_bounds = array<i64: 1, 16, 1024>}, {pipeline_mode = #tpu.pipeline_mode<synchronous>, transform_indices = @transform_1, window_bounds = array<i64: 16, 1>}, {pipeline_mode = #tpu.pipeline_mode<synchronous>, transform_indices = @transform_2, window_bounds = array<i64: 16, 1>}, {transform_indices = @transform_3, window_bounds = array<i64: 1, 16, 1024>}]} {
    %c0 = arith.constant 0 : index
    %c0_0 = arith.constant 0 : index
    %c0_1 = arith.constant 0 : index
    %0 = vector.load %arg1[%c0, %c0_0, %c0_1] : memref<1x16x1024xbf16, #tpu.memory_space<vmem>>, vector<1x16x1024xbf16>
    %1 = vector.shape_cast %0 : vector<1x16x1024xbf16> to vector<16x1024xbf16>
    %2 = arith.extf %1 : vector<16x1024xbf16> to vector<16x1024xf32>
    %cst = arith.constant dense<0.000000e+00> : vector<16xf32>
    %3 = vector.multi_reduction <add>, %2, %cst [1] : vector<16x1024xf32> to vector<16xf32>
    %4 = vector.shape_cast %3 : vector<16xf32> to vector<16x1xf32>
    %5 = arith.mulf %2, %2 : vector<16x1024xf32>
    %cst_2 = arith.constant dense<0.000000e+00> : vector<16xf32>
    %6 = vector.multi_reduction <add>, %5, %cst_2 [1] : vector<16x1024xf32> to vector<16xf32>
    %7 = vector.shape_cast %6 : vector<16xf32> to vector<16x1xf32>
    %cst_3 = arith.constant 1.024000e+03 : f32
    %8 = vector.broadcast %cst_3 : f32 to vector<16x1xf32>
    %9 = arith.divf %4, %8 : vector<16x1xf32>
    %cst_4 = arith.constant 1.024000e+03 : f32
    %10 = vector.broadcast %cst_4 : f32 to vector<16x1xf32>
    %11 = arith.divf %7, %10 : vector<16x1xf32>
    %12 = arith.mulf %9, %9 : vector<16x1xf32>
    %13 = arith.subf %11, %12 : vector<16x1xf32>
    %cst_5 = arith.constant 0.000000e+00 : f32
    %14 = vector.broadcast %cst_5 : f32 to vector<16x1xf32>
    %15 = arith.maximumf %13, %14 : vector<16x1xf32>
    %cst_6 = arith.constant 9.99999974E-6 : f32
    %16 = vector.broadcast %cst_6 : f32 to vector<16x1xf32>
    %17 = arith.addf %15, %16 : vector<16x1xf32>
    %18 = math.rsqrt %17 : vector<16x1xf32>
    %19 = vector.broadcast %9 : vector<16x1xf32> to vector<16x1024xf32>
    %20 = arith.subf %2, %19 : vector<16x1024xf32>
    %c0_7 = arith.constant 0 : index
    %c0_8 = arith.constant 0 : index
    %21 = vector.load %arg2[%c0_7, %c0_8] : memref<16x1xf32, #tpu.memory_space<vmem>>, vector<16x1xf32>
    %22 = arith.mulf %18, %21 : vector<16x1xf32>
    %23 = vector.broadcast %22 : vector<16x1xf32> to vector<16x1024xf32>
    %24 = arith.mulf %20, %23 : vector<16x1024xf32>
    %c0_9 = arith.constant 0 : index
    %c0_10 = arith.constant 0 : index
    %25 = vector.load %arg3[%c0_9, %c0_10] : memref<16x1xf32, #tpu.memory_space<vmem>>, vector<16x1xf32>
    %26 = vector.broadcast %25 : vector<16x1xf32> to vector<16x1024xf32>
    %27 = arith.addf %24, %26 : vector<16x1024xf32>
    %cst_11 = arith.constant 0.000000e+00 : f32
    %28 = vector.broadcast %cst_11 : f32 to vector<16x1024xf32>
    %29 = arith.maximumf %27, %28 : vector<16x1024xf32>
    %30 = arith.truncf %29 : vector<16x1024xf32> to vector<16x1024xbf16>
    %c0_12 = arith.constant 0 : index
    %c0_13 = arith.constant 0 : index
    %c0_14 = arith.constant 0 : index
    %31 = vector.load %arg4[%c0_12, %c0_13, %c0_14] : memref<1x16x1024xbf16, #tpu.memory_space<vmem>>, vector<1x16x1024xbf16>
    %32 = vector.shape_cast %31 : vector<1x16x1024xbf16> to vector<16x1024xbf16>
    %33 = vector.shape_cast %30 : vector<16x1024xbf16> to vector<1x16x1024xbf16>
    tpu.vector_store %arg4[%c0_12, %c0_13, %c0_14], %33 {strides = array<i32>} : memref<1x16x1024xbf16, #tpu.memory_space<vmem>>, vector<1x16x1024xbf16>,
    return
  }
  func.func @transform_0(%arg0: i32) -> (i32, i32, i32) {
    %c0_i32 = arith.constant 0 : i32
    %c0_i32_0 = arith.constant 0 : i32
    %c0_i32_1 = arith.constant 0 : i32
    return %arg0, %c0_i32, %c0_i32_0 : i32, i32, i32
  }
  func.func @transform_1(%arg0: i32) -> (i32, i32) {
    %c0_i32 = arith.constant 0 : i32
    %c0_i32_0 = arith.constant 0 : i32
    %c0_i32_1 = arith.constant 0 : i32
    return %c0_i32, %c0_i32_0 : i32, i32
  }
  func.func @transform_2(%arg0: i32) -> (i32, i32) {
    %c0_i32 = arith.constant 0 : i32
    %c0_i32_0 = arith.constant 0 : i32
    %c0_i32_1 = arith.constant 0 : i32
    return %c0_i32, %c0_i32_0 : i32, i32
  }
  func.func @transform_3(%arg0: i32) -> (i32, i32, i32) {
    %c0_i32 = arith.constant 0 : i32
    %c0_i32_0 = arith.constant 0 : i32
    %c0_i32_1 = arith.constant 0 : i32
    return %arg0, %c0_i32, %c0_i32_0 : i32, i32, i32
  }
}

module attributes {stable_mosaic.version = 11 : i64} {
  func.func @_gn_act_kernel(%arg0: i32, %arg1: memref<1x16x1024xbf16, #tpu.memory_space<vmem>>, %arg2: memref<16x1xf32, #tpu.memory_space<vmem>>, %arg3: memref<16x1xf32, #tpu.memory_space<vmem>>, %arg4: memref<1x16x1024xf32, #tpu.memory_space<vmem>>) attributes {dimension_semantics = [#tpu.dimension_semantics<parallel>], iteration_bounds = array<i64: 2>, scalar_prefetch = 0 : i64, scratch_operands = 0 : i64, tpu.core_type = #tpu.core_type<tc>, window_params = [{transform_indices = @transform_0, window_bounds = array<i64: 1, 16, 1024>}, {pipeline_mode = #tpu.pipeline_mode<synchronous>, transform_indices = @transform_1, window_bounds = array<i64: 16, 1>}, {pipeline_mode = #tpu.pipeline_mode<synchronous>, transform_indices = @transform_2, window_bounds = array<i64: 16, 1>}, {transform_indices = @transform_3, window_bounds = array<i64: 1, 16, 1024>}]} {
    %c0 = arith.constant 0 : index
    %c0_0 = arith.constant 0 : index
    %c0_1 = arith.constant 0 : index
    %0 = vector.load %arg1[%c0, %c0_0, %c0_1] : memref<1x16x1024xbf16, #tpu.memory_space<vmem>>, vector<1x16x1024xbf16>
    %1 = vector.shape_cast %0 : vector<1x16x1024xbf16> to vector<16x1024xbf16>
    %2 = arith.extf %1 : vector<16x1024xbf16> to vector<16x1024xf32>
    %cst = arith.constant dense<0.000000e+00> : vector<16xf32>
    %3 = vector.multi_reduction <add>, %2, %cst [1] : vector<16x1024xf32> to vector<16xf32>
    %4 = vector.shape_cast %3 : vector<16xf32> to vector<16x1xf32>
    %5 = arith.mulf %2, %2 : vector<16x1024xf32>
    %cst_2 = arith.constant dense<0.000000e+00> : vector<16xf32>
    %6 = vector.multi_reduction <add>, %5, %cst_2 [1] : vector<16x1024xf32> to vector<16xf32>
    %7 = vector.shape_cast %6 : vector<16xf32> to vector<16x1xf32>
    %cst_3 = arith.constant 1.024000e+03 : f32
    %8 = vector.broadcast %cst_3 : f32 to vector<16x1xf32>
    %9 = arith.divf %4, %8 : vector<16x1xf32>
    %cst_4 = arith.constant 1.024000e+03 : f32
    %10 = vector.broadcast %cst_4 : f32 to vector<16x1xf32>
    %11 = arith.divf %7, %10 : vector<16x1xf32>
    %12 = arith.mulf %9, %9 : vector<16x1xf32>
    %13 = arith.subf %11, %12 : vector<16x1xf32>
    %cst_5 = arith.constant 0.000000e+00 : f32
    %14 = vector.broadcast %cst_5 : f32 to vector<16x1xf32>
    %15 = arith.maximumf %13, %14 : vector<16x1xf32>
    %cst_6 = arith.constant 9.99999974E-6 : f32
    %16 = vector.broadcast %cst_6 : f32 to vector<16x1xf32>
    %17 = arith.addf %15, %16 : vector<16x1xf32>
    %18 = math.rsqrt %17 : vector<16x1xf32>
    %19 = vector.broadcast %9 : vector<16x1xf32> to vector<16x1024xf32>
    %20 = arith.subf %2, %19 : vector<16x1024xf32>
    %c0_7 = arith.constant 0 : index
    %c0_8 = arith.constant 0 : index
    %21 = vector.load %arg2[%c0_7, %c0_8] : memref<16x1xf32, #tpu.memory_space<vmem>>, vector<16x1xf32>
    %22 = arith.mulf %18, %21 : vector<16x1xf32>
    %23 = vector.broadcast %22 : vector<16x1xf32> to vector<16x1024xf32>
    %24 = arith.mulf %20, %23 : vector<16x1024xf32>
    %c0_9 = arith.constant 0 : index
    %c0_10 = arith.constant 0 : index
    %25 = vector.load %arg3[%c0_9, %c0_10] : memref<16x1xf32, #tpu.memory_space<vmem>>, vector<16x1xf32>
    %26 = vector.broadcast %25 : vector<16x1xf32> to vector<16x1024xf32>
    %27 = arith.addf %24, %26 : vector<16x1024xf32>
    %cst_11 = arith.constant 0.000000e+00 : f32
    %28 = vector.broadcast %cst_11 : f32 to vector<16x1024xf32>
    %29 = arith.cmpf oge, %27, %28 : vector<16x1024xf32>
    %cst_12 = arith.constant 1.000000e-01 : f32
    %30 = vector.broadcast %cst_12 : f32 to vector<16x1024xf32>
    %31 = arith.mulf %30, %27 : vector<16x1024xf32>
    %32 = arith.select %29, %27, %31 : vector<16x1024xi1>, vector<16x1024xf32>
    %c0_13 = arith.constant 0 : index
    %c0_14 = arith.constant 0 : index
    %c0_15 = arith.constant 0 : index
    %33 = vector.load %arg4[%c0_13, %c0_14, %c0_15] : memref<1x16x1024xf32, #tpu.memory_space<vmem>>, vector<1x16x1024xf32>
    %34 = vector.shape_cast %33 : vector<1x16x1024xf32> to vector<16x1024xf32>
    %35 = vector.shape_cast %32 : vector<16x1024xf32> to vector<1x16x1024xf32>
    tpu.vector_store %arg4[%c0_13, %c0_14, %c0_15], %35 {strides = array<i32>} : memref<1x16x1024xf32, #tpu.memory_space<vmem>>, vector<1x16x1024xf32>,
    return
  }
  func.func @transform_0(%arg0: i32) -> (i32, i32, i32) {
    %c0_i32 = arith.constant 0 : i32
    %c0_i32_0 = arith.constant 0 : i32
    %c0_i32_1 = arith.constant 0 : i32
    return %arg0, %c0_i32, %c0_i32_0 : i32, i32, i32
  }
  func.func @transform_1(%arg0: i32) -> (i32, i32) {
    %c0_i32 = arith.constant 0 : i32
    %c0_i32_0 = arith.constant 0 : i32
    %c0_i32_1 = arith.constant 0 : i32
    return %c0_i32, %c0_i32_0 : i32, i32
  }
  func.func @transform_2(%arg0: i32) -> (i32, i32) {
    %c0_i32 = arith.constant 0 : i32
    %c0_i32_0 = arith.constant 0 : i32
    %c0_i32_1 = arith.constant 0 : i32
    return %c0_i32, %c0_i32_0 : i32, i32
  }
  func.func @transform_3(%arg0: i32) -> (i32, i32, i32) {
    %c0_i32 = arith.constant 0 : i32
    %c0_i32_0 = arith.constant 0 : i32
    %c0_i32_1 = arith.constant 0 : i32
    return %arg0, %c0_i32, %c0_i32_0 : i32, i32, i32
  }
}

module attributes {stable_mosaic.version = 11 : i64} {
  func.func @_mm_kernel(%arg0: i32, %arg1: i32, %arg2: memref<16x144xbf16, #tpu.memory_space<vmem>>, %arg3: memref<1x144x512xbf16, #tpu.memory_space<vmem>>, %arg4: memref<1x16x512xbf16, #tpu.memory_space<vmem>>) attributes {dimension_semantics = [#tpu.dimension_semantics<parallel>, #tpu.dimension_semantics<parallel>], iteration_bounds = array<i64: 2, 2>, scalar_prefetch = 0 : i64, scratch_operands = 0 : i64, tpu.core_type = #tpu.core_type<tc>, window_params = [{pipeline_mode = #tpu.pipeline_mode<synchronous>, transform_indices = @transform_0, window_bounds = array<i64: 16, 144>}, {transform_indices = @transform_1, window_bounds = array<i64: 1, 144, 512>}, {transform_indices = @transform_2, window_bounds = array<i64: 1, 16, 512>}]} {
    %c0 = arith.constant 0 : index
    %c0_0 = arith.constant 0 : index
    %0 = vector.load %arg2[%c0, %c0_0] : memref<16x144xbf16, #tpu.memory_space<vmem>>, vector<16x144xbf16>
    %c0_1 = arith.constant 0 : index
    %c0_2 = arith.constant 0 : index
    %c0_3 = arith.constant 0 : index
    %1 = vector.load %arg3[%c0_1, %c0_2, %c0_3] : memref<1x144x512xbf16, #tpu.memory_space<vmem>>, vector<1x144x512xbf16>
    %2 = vector.shape_cast %1 : vector<1x144x512xbf16> to vector<144x512xbf16>
    %cst = arith.constant dense<0.000000e+00> : vector<16x512xf32>
    %3 = tpu.matmul %0, %2, %cst {dimension_numbers = #tpu.dot_dimension_numbers<[1], [0], [0], [1], [0, 0, 1, 1], [], []>} : vector<16x144xbf16>, vector<144x512xbf16>, vector<16x512xf32> -> vector<16x512xf32>
    %4 = arith.truncf %3 : vector<16x512xf32> to vector<16x512xbf16>
    %c0_4 = arith.constant 0 : index
    %c0_5 = arith.constant 0 : index
    %c0_6 = arith.constant 0 : index
    %5 = vector.load %arg4[%c0_4, %c0_5, %c0_6] : memref<1x16x512xbf16, #tpu.memory_space<vmem>>, vector<1x16x512xbf16>
    %6 = vector.shape_cast %5 : vector<1x16x512xbf16> to vector<16x512xbf16>
    %7 = vector.shape_cast %4 : vector<16x512xbf16> to vector<1x16x512xbf16>
    tpu.vector_store %arg4[%c0_4, %c0_5, %c0_6], %7 {strides = array<i32>} : memref<1x16x512xbf16, #tpu.memory_space<vmem>>, vector<1x16x512xbf16>,
    return
  }
  func.func @transform_0(%arg0: i32, %arg1: i32) -> (i32, i32) {
    %c0_i32 = arith.constant 0 : i32
    %c0_i32_0 = arith.constant 0 : i32
    %c0_i32_1 = arith.constant 0 : i32
    return %c0_i32, %c0_i32_0 : i32, i32
  }
  func.func @transform_1(%arg0: i32, %arg1: i32) -> (i32, i32, i32) {
    %c0_i32 = arith.constant 0 : i32
    %c0_i32_0 = arith.constant 0 : i32
    return %arg0, %c0_i32, %arg1 : i32, i32, i32
  }
  func.func @transform_2(%arg0: i32, %arg1: i32) -> (i32, i32, i32) {
    %c0_i32 = arith.constant 0 : i32
    %c0_i32_0 = arith.constant 0 : i32
    return %arg0, %c0_i32, %arg1 : i32, i32, i32
  }
}

</mosaic_0001>

<bundles_post_ra>
// kernel: decoder_block_forward.4
= control target key start
LH: loop header
LB: loop body
LE: loop exit
PB: predicated region body
PF: predicated region fallthrough
CT: control target
= control target key end

     0   :  { %s906_s9 = smov 0   ;;  %s908_s10 = smov 0   ;;  %s1011_s0 = inlined_call_operand.vmem [shape: bf16[64,128], index: 0, kind: input, shape index: {}]   ;;  %s1012_s1 = inlined_call_operand.vmem [shape: bf16[2,128,289], index: 1, kind: input, shape index: {}]   ;;  %s1013_s2 = inlined_call_operand.vmem [shape: bf16[2,64,289], index: 2, kind: output, shape index: {}]  }
   0x1   :  { %s910_s11 = smov 0  }
   0x2 LB: > { %s24_s12 = sadd.s32 1, %s884_s10  ;;  %p702_p0 = scmp.ge.s32.totalorder %s888_s11, 1  ;;  %s888_s11 = sphi %s910_s11, %s12_s11   ;;  %s884_s10 = sphi %s908_s10, %s1015_s10   ;;  %s880_s9 = sphi %s906_s9, %s1014_s9  }
   0x3   : > { %p26_p1 = scmp.ge.s32.totalorder %s24_s12, 2  ;;  %p133_p2 = scmp.lt.s32.totalorder %s888_s11, 3 }
   0x5   : > { %s1017_s12 = smov (%p26_p1, %s24_s12), 0  ;;  %p134_p3 = pnand %p702_p0, %p133_p2 }
   0x6   : > { %p164_p4 = scmp.lt.s32.totalorder (!%p134_p3), %s880_s9, 1  ;;  %v890_v0 = vmov (!%p134_p3), 0   ;;  %v859_v1 = vld [vmem:[%s1011_s0] sm:$0xff] (!%p134_p3)   ;;  %v862_v26 = vld [vmem:[%s1011_s0 + $0x8] sm:$0xff] (!%p134_p3)   ;;  %v864_v27 = vld [vmem:[%s1011_s0 + $0x10] sm:$0xff] (!%p134_p3)   ;;  %vm595_vm0 = vcmask (!%p134_p3), 265216  }
   0x7   : > { %137 = sbr.rel (%p134_p3) target bundleno = 293 (0x125), region = 28  ;;  %408 = vmatprep.mubr.bf16.mxu0 (!%p134_p3), %v890_v0  ;;  %795 = vmatprep.mubr.bf16.mxu1 (!%p134_p3), %v859_v1  ;;  %v865_v28 = vld [vmem:[%s1011_s0 + $0x18] sm:$0xff] (!%p134_p3)  }
   0xe   : > { %s1019_s9 = smov (!%p164_p4, %s880_s9), 1 }
   0xf   : > { %s803_s15 = smul.u32 192, %s1019_s9 }
  0x10   : > { %s804_s25 = smul.u32 96, %s1019_s9 }
  0x11   : > { %s934_s18 = scalar_lea.vmem %s1012_s1, %s803_s15 }
  0x12   : > { %v830_v2 = vld [vmem:[%s934_s18 + $0x4] ss:$12 sps:$4 sm:$0xff]   ;;  %v832_v3 = vld [vmem:[%s934_s18] ss:$12 sps:$4 sm:$0xff]   ;;  %v833_v4 = vld [vmem:[%s934_s18 + $0x1c] ss:$12 sps:$4 sm:$0xff]   ;;  %s976_s28 = scalar_lea.vmem %s1013_s2, %s804_s25 }
  0x13   : > { %376 = vmatprep.subr.bf16.mxu0 %v830_v2  ;;  %v835_v5 = vld [vmem:[%s934_s18 + $0x18] ss:$12 sps:$4 sm:$0xff]   ;;  %v836_v6 = vld [vmem:[%s934_s18 + $0x34] ss:$12 sps:$4 sm:$0xff]   ;;  %v838_v8 = vld [vmem:[%s934_s18 + $0x30] ss:$12 sps:$4 sm:$0xff]  }
  0x14   : > { %377 = vmatpush1.bf16.msra.mxu0 %v832_v3  ;;  %v842_v7 = vld [vmem:[%s934_s18 + $0x8] ss:$12 sps:$4 sm:$0xff]   ;;  %v839_v9 = vld [vmem:[%s934_s18 + $0x4c] ss:$12 sps:$4 sm:$0xff]   ;;  %v843_v13 = vld [vmem:[%s934_s18 + $0x64] ss:$12 sps:$4 sm:$0xff]  }
  0x15   : > { %378 = vmatprep.subr.bf16.mxu0 %v833_v4  ;;  %779 = vmatprep.subr.bf16.mxu1 %v842_v7  ;;  %v846_v10 = vld [vmem:[%s934_s18 + $0x20] ss:$12 sps:$4 sm:$0xff]   ;;  %v850_v11 = vld [vmem:[%s934_s18 + $0x38] ss:$12 sps:$4 sm:$0xff]   ;;  %v841_v12 = vld [vmem:[%s934_s18 + $0x48] ss:$12 sps:$4 sm:$0xff]  }
  0x16   : > { %780 = vmatpush3.bf16.msra.mxu1 %v842_v7  ;;  %v854_v14 = vld [vmem:[%s934_s18 + $0x50] ss:$12 sps:$4 sm:$0xff]   ;;  %v845_v15 = vld [vmem:[%s934_s18 + $0x60] ss:$12 sps:$4 sm:$0xff]   ;;  %v858_v17 = vld [vmem:[%s934_s18 + $0x68] ss:$12 sps:$4 sm:$0xff]  }
  0x17   : > { %781 = vmatprep.subr.bf16.mxu1 %v846_v10  ;;  %v847_v16 = vld [vmem:[%s934_s18 + $0x7c] ss:$12 sps:$4 sm:$0xff]   ;;  %v849_v18 = vld [vmem:[%s934_s18 + $0x78] ss:$12 sps:$4 sm:$0xff]   ;;  %v851_v19 = vld [vmem:[%s934_s18 + $0x94] ss:$12 sps:$4 sm:$0xff]  }
  0x18   : > { %379 = vmatpush1.bf16.msra.mxu0 %v835_v5  ;;  %v860_v20 = vld [vmem:[%s934_s18 + $0x80] ss:$12 sps:$4 sm:$0xff]   ;;  %v853_v21 = vld [vmem:[%s934_s18 + $0x90] ss:$12 sps:$4 sm:$0xff]   ;;  %v861_v23 = vld [vmem:[%s934_s18 + $0x98] ss:$12 sps:$4 sm:$0xff]  }
  0x19   : > { %380 = vmatprep.subr.bf16.mxu0 %v836_v6  ;;  %v855_v22 = vld [vmem:[%s934_s18 + $0xac] ss:$12 sps:$4 sm:$0xff]   ;;  %v857_v24 = vld [vmem:[%s934_s18 + $0xa8] ss:$12 sps:$4 sm:$0xff]   ;;  %v863_v25 = vld [vmem:[%s934_s18 + $0xb0] ss:$12 sps:$4 sm:$0xff]  }
  0x1a   : > { %782 = vmatpush3.bf16.msra.mxu1 %v846_v10 }
  0x1b   : > { %783 = vmatprep.subr.bf16.mxu1 %v850_v11 }
  0x1c   : > { %381 = vmatpush1.bf16.msra.mxu0 %v838_v8 }
  0x1d   : > { %382 = vmatprep.subr.bf16.mxu0 %v839_v9 }
  0x1e   : > { %784 = vmatpush3.bf16.msra.mxu1 %v850_v11 }
  0x1f   : > { %785 = vmatprep.subr.bf16.mxu1 %v854_v14 }
  0x20   : > { %383 = vmatpush1.bf16.msra.mxu0 %v841_v12 }
  0x21   : > { %384 = vmatprep.subr.bf16.mxu0 %v843_v13 }
  0x22   : > { %786 = vmatpush3.bf16.msra.mxu1 %v854_v14 }
  0x23   : > { %787 = vmatprep.subr.bf16.mxu1 %v858_v17 }
  0x24   : > { %385 = vmatpush1.bf16.msra.mxu0 %v845_v15 }
  0x25   : > { %386 = vmatprep.subr.bf16.mxu0 %v847_v16 }
  0x26   : > { %788 = vmatpush3.bf16.msra.mxu1 %v858_v17 }
  0x27   : > { %789 = vmatprep.subr.bf16.mxu1 %v860_v20 }
  0x28   : > { %387 = vmatpush1.bf16.msra.mxu0 %v849_v18 }
  0x29   : > { %388 = vmatprep.subr.bf16.mxu0 %v851_v19 }
  0x2a   : > { %790 = vmatpush3.bf16.msra.mxu1 %v860_v20 }
  0x2b   : > { %791 = vmatprep.subr.bf16.mxu1 %v861_v23 }
  0x2c   : > { %389 = vmatpush1.bf16.msra.mxu0 %v853_v21 }
  0x2d   : > { %390 = vmatprep.subr.bf16.mxu0 %v855_v22 }
  0x2e   : > { %792 = vmatpush3.bf16.msra.mxu1 %v861_v23 }
  0x2f   : > { %793 = vmatprep.subr.bf16.mxu1 %v863_v25 }
  0x30   : > { %391 = vmatpush1.bf16.msra.mxu0 %v857_v24 }
  0x32   : > { %794 = vmatpush3.bf16.msra.mxu1 %v863_v25 }
  0x33   : > { %409 = vmatmul.mubr.bf16.vlgmr.msra.gmra.mrb[0].mxu0 %v859_v1 }
  0x34   : > { %418 = vmatprep.mubr.bf16.mxu0 %v890_v0 }
  0x35   : > { %796 = vmatmul.mubr.bf16.vlgmr.msra.gmra.mrb[0].mxu1 %v862_v26 }
  0x36   : > { %799 = vmatprep.mubr.bf16.mxu1 %v864_v27 }
  0x3b   : > { %419 = vmatmul.mubr.bf16.gmra.mrb[4].mxu0 %v862_v26 }
  0x3c   : > { %428 = vmatprep.mubr.bf16.mxu0 %v890_v0 }
  0x3d   : > { %800 = vmatmul.mubr.bf16.gmra.mrb[4].mxu1 %v865_v28 }
  0x43   : > { %429 = vmatmul.mubr.bf16.gmra.mrb[8].mxu0 %v864_v27 }
  0x44   : > { %438 = vmatprep.mubr.bf16.mxu0 %v890_v0 }
  0x4b   : > { %439 = vmatmul.mubr.bf16.gmra.mrb[12].mxu0 %v865_v28 }
 0x106   : > { %v410_v29 = vpop.f32.mrb[0].mxu0 }
 0x107   : > { %v412_v30 = vpop.f32.mrb[1].mxu0 }
 0x108   : > { %v751_v31 = vpack.c.bf16 %v412_v30, %v410_v29  ;;  %v414_v32 = vpop.f32.mrb[2].mxu0  ;;  %v797_v35 = vpop.f32.mrb[0].mxu1 }
 0x109   : > { %v416_v33 = vpop.f32.mrb[3].mxu0  ;;  %v756_v36 = vpack.c.bf16 %v797_v35, %v797_v35  ;;  %v483_v37 = vpop.f32.mrb[1].mxu1 }
 0x10a   : > { %594 = vst [vmem:[%s976_s28] sm:$0xff] %v751_v31  ;;  %v753_v34 = vpack.c.bf16 %v416_v33, %v414_v32  ;;  %v752_v39 = vpack.c.bf16 %v483_v37, %v483_v37  ;;  %v798_v40 = vpop.f32.mrb[2].mxu1 }
 0x10b   : > { %600 = vst.msk [vmem:[%s976_s28 + $0x20] sm:$0xf] %vm595_vm0, %v756_v36  ;;  %v758_v42 = vpack.c.bf16 %v798_v40, %v798_v40  ;;  %v486_v43 = vpop.f32.mrb[3].mxu1 }
 0x10c   : > { %597 = vst [vmem:[%s976_s28 + $0xc] sm:$0xff] %v753_v34  ;;  %596 = vst.msk [vmem:[%s976_s28 + $0x8] sm:$0xf] %vm595_vm0, %v752_v39  ;;  %v754_v46 = vpack.c.bf16 %v486_v43, %v486_v43 }
 0x10d   : > { %602 = vst.msk [vmem:[%s976_s28 + $0x2c] sm:$0xf] %vm595_vm0, %v758_v42 }
 0x10e   : > { %v420_v38 = vpop.f32.mrb[4].mxu0  ;;  %598 = vst.msk [vmem:[%s976_s28 + $0x14] sm:$0xf] %vm595_vm0, %v754_v46 }
 0x10f   : > { %v422_v41 = vpop.f32.mrb[5].mxu0 }
 0x110   : > { %v755_v44 = vpack.c.bf16 %v422_v41, %v420_v38  ;;  %v424_v45 = vpop.f32.mrb[6].mxu0  ;;  %v801_v49 = vpop.f32.mrb[4].mxu1 }
 0x111   : > { %v426_v47 = vpop.f32.mrb[7].mxu0  ;;  %v764_v50 = vpack.c.bf16 %v801_v49, %v801_v49  ;;  %v499_v51 = vpop.f32.mrb[5].mxu1 }
 0x112   : > { %599 = vst [vmem:[%s976_s28 + $0x18] sm:$0xff] %v755_v44  ;;  %v757_v48 = vpack.c.bf16 %v426_v47, %v424_v45  ;;  %v760_v53 = vpack.c.bf16 %v499_v51, %v499_v51  ;;  %v802_v54 = vpop.f32.mrb[6].mxu1 }
 0x113   : > { %608 = vst.msk [vmem:[%s976_s28 + $0x50] sm:$0xf] %vm595_vm0, %v764_v50  ;;  %v766_v56 = vpack.c.bf16 %v802_v54, %v802_v54  ;;  %v502_v57 = vpop.f32.mrb[7].mxu1 }
 0x114   : > { %601 = vst [vmem:[%s976_s28 + $0x24] sm:$0xff] %v757_v48  ;;  %604 = vst.msk [vmem:[%s976_s28 + $0x38] sm:$0xf] %vm595_vm0, %v760_v53  ;;  %v762_v60 = vpack.c.bf16 %v502_v57, %v502_v57 }
 0x115   : > { %610 = vst.msk [vmem:[%s976_s28 + $0x5c] sm:$0xf] %vm595_vm0, %v766_v56 }
 0x116   : > { %v430_v52 = vpop.f32.mrb[8].mxu0  ;;  %606 = vst.msk [vmem:[%s976_s28 + $0x44] sm:$0xf] %vm595_vm0, %v762_v60 }
 0x117   : > { %v432_v55 = vpop.f32.mrb[9].mxu0 }
 0x118   : > { %v759_v58 = vpack.c.bf16 %v432_v55, %v430_v52  ;;  %v434_v59 = vpop.f32.mrb[10].mxu0 }
 0x119   : > { %v436_v61 = vpop.f32.mrb[11].mxu0 }
 0x11a   : > { %603 = vst [vmem:[%s976_s28 + $0x30] sm:$0xff] %v759_v58  ;;  %v761_v62 = vpack.c.bf16 %v436_v61, %v434_v59 }
 0x11c   : > { %605 = vst [vmem:[%s976_s28 + $0x3c] sm:$0xff] %v761_v62 }
 0x11e   : > { %v440_v63 = vpop.f32.mrb[12].mxu0 }
 0x11f   : > { %v442_v0 = vpop.f32.mrb[13].mxu0 }
 0x120   : > { %v763_v1 = vpack.c.bf16 %v442_v0, %v440_v63  ;;  %v444_v2 = vpop.f32.mrb[14].mxu0 }
 0x121   : > { %v446_v3 = vpop.f32.mrb[15].mxu0 }
 0x122   : > { %607 = vst [vmem:[%s976_s28 + $0x48] sm:$0xff] %v763_v1  ;;  %v765_v4 = vpack.c.bf16 %v446_v3, %v444_v2 }
 0x124   : > { %609 = vst [vmem:[%s976_s28 + $0x54] sm:$0xff] %v765_v4 }
 0x125 PF: > { %s12_s11 = sadd.s32 1, %s888_s11   ;;  %s1014_s9 = smov %s884_s10 }
 0x126   : > { %p9_p5 = scmp.ge.s32.totalorder %s12_s11, 4   ;;  %s1015_s10 = smov %s1017_s12 }
 0x128   :  { %11 = sbr.rel (!%p9_p5) target bundleno = 2 (0x2), region = 58 }

// kernel: decoder_block_forward.5
= control target key start
LH: loop header
LB: loop body
LE: loop exit
PB: predicated region body
PF: predicated region fallthrough
CT: control target
= control target key end

     0   :  { %s536_s12 = smov 0   ;;  %s700_s0 = inlined_call_operand.vmem [shape: bf16[2,16,1024], index: 0, kind: input, shape index: {}]   ;;  %s701_s1 = inlined_call_operand.vmem [shape: f32[16,1], index: 1, kind: input, shape index: {}]   ;;  %s702_s2 = inlined_call_operand.vmem [shape: f32[16,1], index: 2, kind: input, shape index: {}]   ;;  %s703_s3 = inlined_call_operand.vmem [shape: bf16[2,16,1024], index: 3, kind: output, shape index: {}]  }
   0x1 LB: > { %s463_s13 = sadd.s32 4294967295, %s513_s12   ;;  %p467_p0 = scmp.ge.s32.totalorder %s513_s12, 1  ;;  %s513_s12 = sphi %s536_s12, %s13_s12  }
   0x2   : > { %p137_p1 = scmp.lt.s32.totalorder %s513_s12, 3 }
   0x4   : > { %p138_p2 = pnand %p467_p0, %p137_p1 }
   0x5   : > { %p161_p3 = scmp.lt.s32.totalorder (!%p138_p2), %s463_s13, 1 }
   0x6   : > { %141 = sbr.rel (%p138_p2) target bundleno = 344 (0x158), region = 32 }
   0xd   : > { %s705_s13 = smov (!%p161_p3, %s463_s13), 1 }
   0xe   : > { %s482_s14 = sshll.u32 %s705_s13, 6 }
   0xf   : > { %s552_s17 = scalar_lea.vmem %s700_s0, %s482_s14  ;;  %s679_s28 = scalar_lea.vmem %s703_s3, %s482_s14 }
  0x10   : > { %v171_v0 = vld [vmem:[%s552_s17] sm:$0xff]  ;;  %v172_v1 = vld [vmem:[%s552_s17 + $0x8] sm:$0xff]  ;;  %v173_v2 = vld [vmem:[%s552_s17 + $0x10] sm:$0xff] }
  0x11   : > { %v557_v3 = vunpack.c.l.bf16 %v171_v0  ;;  %v559_v4 = vunpack.c.h.bf16 %v171_v0  ;;  %v561_v5 = vunpack.c.l.bf16 %v172_v1  ;;  %v563_v6 = vunpack.c.h.bf16 %v172_v1  ;;  %v175_v8 = vld [vmem:[%s552_s17 + $0x20] sm:$0xff]  ;;  %v174_v9 = vld [vmem:[%s552_s17 + $0x18] sm:$0xff]  ;;  %v176_v14 = vld [vmem:[%s552_s17 + $0x28] sm:$0xff] }
  0x12   : > { %v565_v7 = vunpack.c.l.bf16 %v173_v2  ;;  %v578_v15 = vunpack.c.h.bf16 %v173_v2  ;;  %v583_v19 = vunpack.c.l.bf16 %v175_v8  ;;  %v585_v20 = vunpack.c.l.bf16 %v174_v9  ;;  %v177_v22 = vld [vmem:[%s552_s17 + $0x30] sm:$0xff]  ;;  %v178_v35 = vld [vmem:[%s552_s17 + $0x38] sm:$0xff] }
  0x13   : > { %v195_v10 = vadd.f32 %v559_v4, %v557_v3  ;;  %v213_v11 = vmul.f32 %v557_v3, %v557_v3  ;;  %v214_v12 = vmul.f32 %v559_v4, %v559_v4  ;;  %v215_v13 = vmul.f32 %v561_v5, %v561_v5 }
  0x14   : > { %v216_v17 = vmul.f32 %v563_v6, %v563_v6  ;;  %v587_v21 = vunpack.c.h.bf16 %v174_v9  ;;  %v590_v23 = vunpack.c.h.bf16 %v175_v8  ;;  %v592_v24 = vunpack.c.l.bf16 %v176_v14  ;;  %v308_v9 = vld [vmem:[%s702_s2] sm:$0xff] }
  0x15   : > { %v196_v16 = vadd.f32 %v195_v10, %v561_v5  ;;  %v229_v18 = vadd.f32 %v214_v12, %v213_v11  ;;  %v217_v26 = vmul.f32 %v565_v7, %v565_v7  ;;  %v597_v28 = vunpack.c.h.bf16 %v176_v14 }
  0x16   : > { %v218_v29 = vmul.f32 %v578_v15, %v578_v15  ;;  %v204_v30 = vadd.f32 %v590_v23, %v583_v19  ;;  %v221_v31 = vmul.f32 %v583_v19, %v583_v19  ;;  %v222_v32 = vmul.f32 %v590_v23, %v590_v23 }
  0x17   : > { %v197_v25 = vadd.f32 %v196_v16, %v563_v6  ;;  %v230_v27 = vadd.f32 %v229_v18, %v215_v13  ;;  %v609_v36 = vunpack.c.l.bf16 %v177_v22  ;;  %v223_v37 = vmul.f32 %v592_v24, %v592_v24 }
  0x18   : > { %v219_v38 = vmul.f32 %v585_v20, %v585_v20  ;;  %v615_v39 = vunpack.c.h.bf16 %v177_v22  ;;  %v205_v40 = vadd.f32 %v204_v30, %v592_v24  ;;  %v224_v43 = vmul.f32 %v597_v28, %v597_v28 }
  0x19   : > { %v198_v33 = vadd.f32 %v197_v25, %v565_v7  ;;  %v231_v34 = vadd.f32 %v230_v27, %v216_v17  ;;  %v238_v44 = vadd.f32 %v222_v32, %v221_v31  ;;  %v220_v45 = vmul.f32 %v587_v21, %v587_v21 }
  0x1a   : > { %v623_v46 = vunpack.c.l.bf16 %v178_v35  ;;  %v206_v47 = vadd.f32 %v205_v40, %v597_v28  ;;  %v225_v50 = vmul.f32 %v609_v36, %v609_v36  ;;  %v629_v52 = vunpack.c.h.bf16 %v178_v35 }
  0x1b   : > { %v199_v41 = vadd.f32 %v198_v33, %v578_v15  ;;  %v232_v42 = vadd.f32 %v231_v34, %v217_v26  ;;  %v239_v51 = vadd.f32 %v238_v44, %v223_v37  ;;  %v226_v56 = vmul.f32 %v615_v39, %v615_v39  ;;  %v278_v34 = vld [vmem:[%s701_s1] sm:$0xff] }
  0x1c   : > { %v207_v53 = vadd.f32 %v206_v47, %v609_v36  ;;  %v227_v60 = vmul.f32 %v623_v46, %v623_v46  ;;  %v228_v63 = vmul.f32 %v629_v52, %v629_v52  ;;  %v515_v10 = vmov 0  }
  0x1d   : > { %v200_v48 = vadd.f32 %v199_v41, %v585_v20  ;;  %v233_v49 = vadd.f32 %v232_v42, %v218_v29  ;;  %v240_v57 = vadd.f32 %v239_v51, %v224_v43  ;;  %502 = vset.pattern.permute.xlu1 %v515_v10  ;;  %501 = vset.pattern.permute.xlu0 %v515_v10  ;;  %v309_v42 = vld [vmem:[%s702_s2 + $0x8] sm:$0xff] }
  0x1e   : > { %v208_v58 = vadd.f32 %v207_v53, %v615_v39 }
  0x1f   : > { %v201_v54 = vadd.f32 %v200_v48, %v587_v21  ;;  %v234_v55 = vadd.f32 %v233_v49, %v219_v38  ;;  %v241_v61 = vadd.f32 %v240_v57, %v225_v50  ;;  %v279_v38 = vld [vmem:[%s701_s1 + $0x8] sm:$0xff] }
  0x20   : > { %v209_v62 = vadd.f32 %v208_v58, %v623_v46 }
  0x21   : > { %202 = vadd.xlane.f32.xlu0 %v201_v54  ;;  %v235_v59 = vadd.f32 %v234_v55, %v220_v45  ;;  %v242_v0 = vadd.f32 %v241_v61, %v226_v56 }
  0x22   : > { %v210_v1 = vadd.f32 %v209_v62, %v629_v52 }
  0x23   : > { %236 = vadd.xlane.f32.xlu1 %v235_v59  ;;  %v243_v2 = vadd.f32 %v242_v0, %v227_v60 }
  0x25   : > { %211 = vadd.xlane.f32.xlu0 %v210_v1  ;;  %v244_v8 = vadd.f32 %v243_v2, %v228_v63 }
  0x27   : > { %245 = vadd.xlane.f32.xlu1 %v244_v8 }
  0x38   : > { %312 = vperm.xlu1 %502, %v308_v9  }
  0xae   : > { %v203_v11 = vpop.xlane.xlu0 %202 }
  0xaf   : > { %v248_v12 = vmul.f32 0.0009765625, %v203_v11 }
  0xb0   : > { %v237_v13 = vpop.xlane.xlu1 %236 }
  0xb1   : > { %v250_v14 = vmul.f32 0.0009765625, %v237_v13  ;;  %v252_v16 = vmul.f32 %v248_v12, %v248_v12  ;;  %v262_v43 = vsub.f32 %v557_v3, %v248_v12  ;;  %v263_v44 = vsub.f32 %v559_v4, %v248_v12 }
  0xb2   : > { %v212_v18 = vpop.xlane.xlu0 %211  ;;  %v264_v45 = vsub.f32 %v561_v5, %v248_v12  ;;  %v265_v47 = vsub.f32 %v563_v6, %v248_v12  ;;  %v266_v48 = vsub.f32 %v565_v7, %v248_v12  ;;  %v267_v49 = vsub.f32 %v578_v15, %v248_v12 }
  0xb3   : > { %v254_v17 = vsub.f32 %v250_v14, %v252_v16  ;;  %v645_v22 = vmul.f32 0.0009765625, %v212_v18  ;;  %v268_v50 = vsub.f32 %v585_v20, %v248_v12  ;;  %v269_v51 = vsub.f32 %v587_v21, %v248_v12 }
  0xb4   : > { %v246_v26 = vpop.xlane.xlu1 %245 }
  0xb5   : > { %v256_v25 = vmax.f32 %v254_v17, 0.0  ;;  %v253_v27 = vmul.f32 %v645_v22, %v645_v22  ;;  %v251_v30 = vmul.f32 0.0009765625, %v246_v26  ;;  %v270_v55 = vsub.f32 %v583_v19, %v645_v22 }
  0xb6   : > { %v271_v3 = vsub.f32 %v590_v23, %v645_v22  ;;  %v272_v4 = vsub.f32 %v592_v24, %v645_v22  ;;  %v273_v5 = vsub.f32 %v597_v28, %v645_v22  ;;  %v274_v16 = vsub.f32 %v609_v36, %v645_v22 }
  0xb7   : > { %v258_v29 = vadd.f32 1e-05, %v256_v25  ;;  %v255_v31 = vsub.f32 %v251_v30, %v253_v27  ;;  %v275_v17 = vsub.f32 %v615_v39, %v645_v22  ;;  %v276_v26 = vsub.f32 %v623_v46, %v645_v22 }
  0xb8   : > { %v313_v53 = vpop.permute.xlu1 %312  ;;  %v277_v27 = vsub.f32 %v629_v52, %v645_v22 }
  0xb9   : > { %503 = vrsqrt.f32 %v258_v29  ;;  %v257_v32 = vmax.f32 %v255_v31, 0.0 }
  0xbb   : > { %v259_v33 = vadd.f32 1e-05, %v257_v32 }
  0xbd   : > { %505 = vrsqrt.f32 %v259_v33 }
  0xc3   : > { %v504_v35 = vpop.eup %503 }
  0xc4   : > { %v280_v37 = vmul.f32 %v504_v35, %v278_v34 }
  0xc6   : > { %284 = vperm.xlu0 %501, %v280_v37  }
  0xc7   : > { %v506_v40 = vpop.eup %505 }
  0xc8   : > { %v281_v41 = vmul.f32 %v506_v40, %v279_v38 }
  0xca   : > { %289 = vperm.xlu1 %502, %v281_v41  }
  0xce   : > { %317 = vperm.xlu1 %502, %v309_v42  }
 0x145   : > { %v285_v54 = vpop.permute.xlu0 %284 }
 0x146   : > { %v292_v6 = vmul.f32 %v285_v54, %v262_v43  ;;  %v293_v7 = vmul.f32 %v285_v54, %v263_v44  ;;  %v294_v15 = vmul.f32 %v285_v54, %v264_v45  ;;  %v295_v20 = vmul.f32 %v285_v54, %v265_v47 }
 0x147   : > { %v296_v56 = vmul.f32 %v285_v54, %v266_v48  ;;  %v297_v21 = vmul.f32 %v285_v54, %v267_v49  ;;  %v298_v57 = vmul.f32 %v285_v54, %v268_v50  ;;  %v299_v58 = vmul.f32 %v285_v54, %v269_v51 }
 0x148   : > { %v320_v59 = vadd.f32 %v313_v53, %v292_v6  ;;  %v321_v19 = vadd.f32 %v313_v53, %v293_v7  ;;  %v322_v60 = vadd.f32 %v313_v53, %v294_v15  ;;  %v323_v61 = vadd.f32 %v313_v53, %v295_v20 }
 0x149   : > { %v324_v23 = vadd.f32 %v313_v53, %v296_v56  ;;  %v325_v62 = vadd.f32 %v313_v53, %v297_v21  ;;  %v326_v63 = vadd.f32 %v313_v53, %v298_v57  ;;  %v327_v24 = vadd.f32 %v313_v53, %v299_v58  ;;  %v290_v12 = vpop.permute.xlu1 %289 }
 0x14a   : > { %v336_v0 = vmax.f32 %v320_v59, 0.0  ;;  %v337_v1 = vmax.f32 %v321_v19, 0.0  ;;  %v338_v28 = vmax.f32 %v322_v60, 0.0  ;;  %v339_v2 = vmax.f32 %v323_v61, 0.0 }
 0x14b   : > { %v340_v8 = vmax.f32 %v324_v23, 0.0  ;;  %v341_v9 = vmax.f32 %v325_v62, 0.0  ;;  %v342_v10 = vmax.f32 %v326_v63, 0.0  ;;  %v343_v11 = vmax.f32 %v327_v24, 0.0 }
 0x14c   : > { %v484_v13 = vpack.c.bf16 %v337_v1, %v336_v0  ;;  %v485_v14 = vpack.c.bf16 %v339_v2, %v338_v28  ;;  %v300_v29 = vmul.f32 %v290_v12, %v270_v55  ;;  %v301_v30 = vmul.f32 %v290_v12, %v271_v3 }
 0x14d   : > { %v486_v18 = vpack.c.bf16 %v341_v9, %v340_v8  ;;  %v487_v25 = vpack.c.bf16 %v343_v11, %v342_v10  ;;  %v302_v31 = vmul.f32 %v290_v12, %v272_v4  ;;  %v303_v32 = vmul.f32 %v290_v12, %v273_v5  ;;  %v318_v35 = vpop.permute.xlu1 %317 }
 0x14e   : > { %400 = vst [vmem:[%s679_s28] sm:$0xff] %v484_v13  ;;  %401 = vst [vmem:[%s679_s28 + $0x8] sm:$0xff] %v485_v14  ;;  %v304_v36 = vmul.f32 %v290_v12, %v274_v16  ;;  %v305_v33 = vmul.f32 %v290_v12, %v275_v17  ;;  %v306_v34 = vmul.f32 %v290_v12, %v276_v26 }
 0x14f   : > { %402 = vst [vmem:[%s679_s28 + $0x10] sm:$0xff] %v486_v18  ;;  %403 = vst [vmem:[%s679_s28 + $0x18] sm:$0xff] %v487_v25  ;;  %v307_v39 = vmul.f32 %v290_v12, %v277_v27  ;;  %v328_v37 = vadd.f32 %v318_v35, %v300_v29  ;;  %v329_v38 = vadd.f32 %v318_v35, %v301_v30 }
 0x150   : > { %v330_v40 = vadd.f32 %v318_v35, %v302_v31  ;;  %v331_v46 = vadd.f32 %v318_v35, %v303_v32  ;;  %v332_v41 = vadd.f32 %v318_v35, %v304_v36  ;;  %v333_v52 = vadd.f32 %v318_v35, %v305_v33 }
 0x151   : > { %v334_v22 = vadd.f32 %v318_v35, %v306_v34  ;;  %v335_v42 = vadd.f32 %v318_v35, %v307_v39  ;;  %v344_v43 = vmax.f32 %v328_v37, 0.0  ;;  %v345_v44 = vmax.f32 %v329_v38, 0.0 }
 0x152   : > { %v346_v45 = vmax.f32 %v330_v40, 0.0  ;;  %v347_v47 = vmax.f32 %v331_v46, 0.0  ;;  %v348_v48 = vmax.f32 %v332_v41, 0.0  ;;  %v349_v49 = vmax.f32 %v333_v52, 0.0 }
 0x153   : > { %v350_v50 = vmax.f32 %v334_v22, 0.0  ;;  %v351_v51 = vmax.f32 %v335_v42, 0.0  ;;  %v488_v53 = vpack.c.bf16 %v345_v44, %v344_v43 }
 0x154   : > { %v489_v54 = vpack.c.bf16 %v347_v47, %v346_v45  ;;  %v490_v55 = vpack.c.bf16 %v349_v49, %v348_v48 }
 0x155   : > { %v491_v3 = vpack.c.bf16 %v351_v51, %v350_v50  ;;  %404 = vst [vmem:[%s679_s28 + $0x20] sm:$0xff] %v488_v53 }
 0x156   : > { %405 = vst [vmem:[%s679_s28 + $0x28] sm:$0xff] %v489_v54  ;;  %406 = vst [vmem:[%s679_s28 + $0x30] sm:$0xff] %v490_v55 }
 0x157   : > { %407 = vst [vmem:[%s679_s28 + $0x38] sm:$0xff] %v491_v3 }
 0x158 PF: > { %s13_s12 = sadd.s32 1, %s513_s12  }
 0x159   : > { %p10_p4 = scmp.ge.s32.totalorder %s13_s12, 4  }
 0x15b   :  { %12 = sbr.rel (!%p10_p4) target bundleno = 1 (0x1), region = 62 }

// kernel: decoder_block_forward.7
= control target key start
LH: loop header
LB: loop body
LE: loop exit
PB: predicated region body
PF: predicated region fallthrough
CT: control target
= control target key end

     0   :  { %s512_s12 = smov 0   ;;  %s697_s0 = inlined_call_operand.vmem [shape: bf16[2,16,1024], index: 0, kind: input, shape index: {}]   ;;  %s698_s1 = inlined_call_operand.vmem [shape: f32[16,1], index: 1, kind: input, shape index: {}]   ;;  %s699_s2 = inlined_call_operand.vmem [shape: f32[16,1], index: 2, kind: input, shape index: {}]   ;;  %s700_s3 = inlined_call_operand.vmem [shape: f32[2,16,1024], index: 3, kind: output, shape index: {}]  }
   0x1 LB: > { %s455_s13 = sadd.s32 4294967295, %s489_s12   ;;  %p459_p0 = scmp.ge.s32.totalorder %s489_s12, 1  ;;  %s489_s12 = sphi %s512_s12, %s13_s12  }
   0x2   : > { %p137_p1 = scmp.lt.s32.totalorder %s489_s12, 3 }
   0x4   : > { %p138_p2 = pnand %p459_p0, %p137_p1 }
   0x5   : > { %p161_p3 = scmp.lt.s32.totalorder (!%p138_p2), %s455_s13, 1 }
   0x6   : > { %141 = sbr.rel (%p138_p2) target bundleno = 350 (0x15e), region = 32 }
   0xd   : > { %s702_s13 = smov (!%p161_p3, %s455_s13), 1 }
   0xe   : > { %s466_s14 = sshll.u32 %s702_s13, 6  ;;  %s467_s26 = sshll.u32 %s702_s13, 7 }
   0xf   : > { %s526_s17 = scalar_lea.vmem %s697_s0, %s466_s14  ;;  %s660_s29 = scalar_lea.vmem %s700_s3, %s467_s26 }
  0x10   : > { %v171_v0 = vld [vmem:[%s526_s17] sm:$0xff]  ;;  %v172_v1 = vld [vmem:[%s526_s17 + $0x8] sm:$0xff]  ;;  %v173_v2 = vld [vmem:[%s526_s17 + $0x10] sm:$0xff] }
  0x11   : > { %v531_v3 = vunpack.c.l.bf16 %v171_v0  ;;  %v533_v4 = vunpack.c.h.bf16 %v171_v0  ;;  %v535_v5 = vunpack.c.l.bf16 %v172_v1  ;;  %v537_v6 = vunpack.c.h.bf16 %v172_v1  ;;  %v175_v8 = vld [vmem:[%s526_s17 + $0x20] sm:$0xff]  ;;  %v174_v9 = vld [vmem:[%s526_s17 + $0x18] sm:$0xff]  ;;  %v176_v14 = vld [vmem:[%s526_s17 + $0x28] sm:$0xff] }
  0x12   : > { %v539_v7 = vunpack.c.l.bf16 %v173_v2  ;;  %v552_v15 = vunpack.c.h.bf16 %v173_v2  ;;  %v557_v19 = vunpack.c.l.bf16 %v175_v8  ;;  %v559_v20 = vunpack.c.l.bf16 %v174_v9  ;;  %v177_v22 = vld [vmem:[%s526_s17 + $0x30] sm:$0xff]  ;;  %v178_v35 = vld [vmem:[%s526_s17 + $0x38] sm:$0xff] }
  0x13   : > { %v195_v10 = vadd.f32 %v533_v4, %v531_v3  ;;  %v213_v11 = vmul.f32 %v531_v3, %v531_v3  ;;  %v214_v12 = vmul.f32 %v533_v4, %v533_v4  ;;  %v215_v13 = vmul.f32 %v535_v5, %v535_v5 }
  0x14   : > { %v216_v17 = vmul.f32 %v537_v6, %v537_v6  ;;  %v561_v21 = vunpack.c.h.bf16 %v174_v9  ;;  %v564_v23 = vunpack.c.h.bf16 %v175_v8  ;;  %v566_v24 = vunpack.c.l.bf16 %v176_v14  ;;  %v308_v9 = vld [vmem:[%s699_s2] sm:$0xff] }
  0x15   : > { %v196_v16 = vadd.f32 %v195_v10, %v535_v5  ;;  %v229_v18 = vadd.f32 %v214_v12, %v213_v11  ;;  %v217_v26 = vmul.f32 %v539_v7, %v539_v7  ;;  %v571_v28 = vunpack.c.h.bf16 %v176_v14 }
  0x16   : > { %v218_v29 = vmul.f32 %v552_v15, %v552_v15  ;;  %v204_v30 = vadd.f32 %v564_v23, %v557_v19  ;;  %v221_v31 = vmul.f32 %v557_v19, %v557_v19  ;;  %v222_v32 = vmul.f32 %v564_v23, %v564_v23 }
  0x17   : > { %v197_v25 = vadd.f32 %v196_v16, %v537_v6  ;;  %v230_v27 = vadd.f32 %v229_v18, %v215_v13  ;;  %v583_v36 = vunpack.c.l.bf16 %v177_v22  ;;  %v223_v37 = vmul.f32 %v566_v24, %v566_v24 }
  0x18   : > { %v219_v38 = vmul.f32 %v559_v20, %v559_v20  ;;  %v589_v39 = vunpack.c.h.bf16 %v177_v22  ;;  %v205_v40 = vadd.f32 %v204_v30, %v566_v24  ;;  %v224_v43 = vmul.f32 %v571_v28, %v571_v28 }
  0x19   : > { %v198_v33 = vadd.f32 %v197_v25, %v539_v7  ;;  %v231_v34 = vadd.f32 %v230_v27, %v216_v17  ;;  %v238_v44 = vadd.f32 %v222_v32, %v221_v31  ;;  %v220_v45 = vmul.f32 %v561_v21, %v561_v21 }
  0x1a   : > { %v597_v46 = vunpack.c.l.bf16 %v178_v35  ;;  %v206_v47 = vadd.f32 %v205_v40, %v571_v28  ;;  %v225_v50 = vmul.f32 %v583_v36, %v583_v36  ;;  %v603_v52 = vunpack.c.h.bf16 %v178_v35 }
  0x1b   : > { %v199_v41 = vadd.f32 %v198_v33, %v552_v15  ;;  %v232_v42 = vadd.f32 %v231_v34, %v217_v26  ;;  %v239_v51 = vadd.f32 %v238_v44, %v223_v37  ;;  %v226_v56 = vmul.f32 %v589_v39, %v589_v39  ;;  %v278_v34 = vld [vmem:[%s698_s1] sm:$0xff] }
  0x1c   : > { %v207_v53 = vadd.f32 %v206_v47, %v583_v36  ;;  %v227_v60 = vmul.f32 %v597_v46, %v597_v46  ;;  %v228_v63 = vmul.f32 %v603_v52, %v603_v52  ;;  %v491_v10 = vmov 0  }
  0x1d   : > { %v200_v48 = vadd.f32 %v199_v41, %v559_v20  ;;  %v233_v49 = vadd.f32 %v232_v42, %v218_v29  ;;  %v240_v57 = vadd.f32 %v239_v51, %v224_v43  ;;  %478 = vset.pattern.permute.xlu1 %v491_v10  ;;  %477 = vset.pattern.permute.xlu0 %v491_v10  ;;  %v309_v42 = vld [vmem:[%s699_s2 + $0x8] sm:$0xff] }
  0x1e   : > { %v208_v58 = vadd.f32 %v207_v53, %v589_v39 }
  0x1f   : > { %v201_v54 = vadd.f32 %v200_v48, %v561_v21  ;;  %v234_v55 = vadd.f32 %v233_v49, %v219_v38  ;;  %v241_v61 = vadd.f32 %v240_v57, %v225_v50  ;;  %v279_v38 = vld [vmem:[%s698_s1 + $0x8] sm:$0xff] }
  0x20   : > { %v209_v62 = vadd.f32 %v208_v58, %v597_v46 }
  0x21   : > { %202 = vadd.xlane.f32.xlu0 %v201_v54  ;;  %v235_v59 = vadd.f32 %v234_v55, %v220_v45  ;;  %v242_v0 = vadd.f32 %v241_v61, %v226_v56 }
  0x22   : > { %v210_v1 = vadd.f32 %v209_v62, %v603_v52 }
  0x23   : > { %236 = vadd.xlane.f32.xlu1 %v235_v59  ;;  %v243_v2 = vadd.f32 %v242_v0, %v227_v60 }
  0x25   : > { %211 = vadd.xlane.f32.xlu0 %v210_v1  ;;  %v244_v8 = vadd.f32 %v243_v2, %v228_v63 }
  0x27   : > { %245 = vadd.xlane.f32.xlu1 %v244_v8 }
  0x38   : > { %312 = vperm.xlu1 %478, %v308_v9  }
  0xae   : > { %v203_v11 = vpop.xlane.xlu0 %202 }
  0xaf   : > { %v248_v12 = vmul.f32 0.0009765625, %v203_v11 }
  0xb0   : > { %v237_v13 = vpop.xlane.xlu1 %236 }
  0xb1   : > { %v250_v14 = vmul.f32 0.0009765625, %v237_v13  ;;  %v252_v16 = vmul.f32 %v248_v12, %v248_v12  ;;  %v262_v43 = vsub.f32 %v531_v3, %v248_v12  ;;  %v263_v44 = vsub.f32 %v533_v4, %v248_v12 }
  0xb2   : > { %v212_v18 = vpop.xlane.xlu0 %211  ;;  %v264_v45 = vsub.f32 %v535_v5, %v248_v12  ;;  %v265_v47 = vsub.f32 %v537_v6, %v248_v12  ;;  %v266_v48 = vsub.f32 %v539_v7, %v248_v12  ;;  %v267_v49 = vsub.f32 %v552_v15, %v248_v12 }
  0xb3   : > { %v254_v17 = vsub.f32 %v250_v14, %v252_v16  ;;  %v619_v22 = vmul.f32 0.0009765625, %v212_v18  ;;  %v268_v50 = vsub.f32 %v559_v20, %v248_v12  ;;  %v269_v51 = vsub.f32 %v561_v21, %v248_v12 }
  0xb4   : > { %v246_v26 = vpop.xlane.xlu1 %245 }
  0xb5   : > { %v256_v25 = vmax.f32 %v254_v17, 0.0  ;;  %v253_v27 = vmul.f32 %v619_v22, %v619_v22  ;;  %v251_v30 = vmul.f32 0.0009765625, %v246_v26  ;;  %v270_v53 = vsub.f32 %v557_v19, %v619_v22 }
  0xb6   : > { %v271_v3 = vsub.f32 %v564_v23, %v619_v22  ;;  %v272_v4 = vsub.f32 %v566_v24, %v619_v22  ;;  %v273_v5 = vsub.f32 %v571_v28, %v619_v22  ;;  %v274_v15 = vsub.f32 %v583_v36, %v619_v22 }
  0xb7   : > { %v258_v29 = vadd.f32 1e-05, %v256_v25  ;;  %v255_v31 = vsub.f32 %v251_v30, %v253_v27  ;;  %v275_v20 = vsub.f32 %v589_v39, %v619_v22  ;;  %v276_v19 = vsub.f32 %v597_v46, %v619_v22 }
  0xb8   : > { %v313_v6 = vpop.permute.xlu1 %312  ;;  %v277_v21 = vsub.f32 %v603_v52, %v619_v22 }
  0xb9   : > { %479 = vrsqrt.f32 %v258_v29  ;;  %v257_v32 = vmax.f32 %v255_v31, 0.0 }
  0xbb   : > { %v259_v33 = vadd.f32 1e-05, %v257_v32 }
  0xbd   : > { %481 = vrsqrt.f32 %v259_v33 }
  0xc3   : > { %v480_v35 = vpop.eup %479 }
  0xc4   : > { %v280_v37 = vmul.f32 %v480_v35, %v278_v34 }
  0xc6   : > { %284 = vperm.xlu0 %477, %v280_v37  }
  0xc7   : > { %v482_v40 = vpop.eup %481 }
  0xc8   : > { %v281_v41 = vmul.f32 %v482_v40, %v279_v38 }
  0xca   : > { %289 = vperm.xlu1 %478, %v281_v41  }
  0xce   : > { %317 = vperm.xlu1 %478, %v309_v42  }
 0x145   : > { %v285_v7 = vpop.permute.xlu0 %284 }
 0x146   : > { %v292_v23 = vmul.f32 %v285_v7, %v262_v43  ;;  %v293_v24 = vmul.f32 %v285_v7, %v263_v44  ;;  %v294_v54 = vmul.f32 %v285_v7, %v264_v45  ;;  %v295_v55 = vmul.f32 %v285_v7, %v265_v47 }
 0x147   : > { %v296_v28 = vmul.f32 %v285_v7, %v266_v48  ;;  %v297_v56 = vmul.f32 %v285_v7, %v267_v49  ;;  %v298_v57 = vmul.f32 %v285_v7, %v268_v50  ;;  %v299_v58 = vmul.f32 %v285_v7, %v269_v51 }
 0x148   : > { %v320_v59 = vadd.f32 %v313_v6, %v292_v23  ;;  %v321_v36 = vadd.f32 %v313_v6, %v293_v24  ;;  %v322_v60 = vadd.f32 %v313_v6, %v294_v54  ;;  %v323_v61 = vadd.f32 %v313_v6, %v295_v55 }
 0x149   : > { %v324_v39 = vadd.f32 %v313_v6, %v296_v28  ;;  %v325_v62 = vadd.f32 %v313_v6, %v297_v56  ;;  %v326_v63 = vadd.f32 %v313_v6, %v298_v57  ;;  %v327_v46 = vadd.f32 %v313_v6, %v299_v58  ;;  %v290_v52 = vpop.permute.xlu1 %289 }
 0x14a   : > { %vm336_vm0 = vcmp.ge.f32.partialorder %v320_v59, 0.0  ;;  %vm337_vm1 = vcmp.ge.f32.partialorder %v321_v36, 0.0  ;;  %vm338_vm2 = vcmp.ge.f32.partialorder %v322_v60, 0.0  ;;  %vm339_vm3 = vcmp.ge.f32.partialorder %v323_v61, 0.0 }
 0x14b   : > { %vm340_vm4 = vcmp.ge.f32.partialorder %v324_v39, 0.0  ;;  %vm341_vm5 = vcmp.ge.f32.partialorder %v325_v62, 0.0  ;;  %vm342_vm6 = vcmp.ge.f32.partialorder %v326_v63, 0.0  ;;  %vm343_vm7 = vcmp.ge.f32.partialorder %v327_v46, 0.0 }
 0x14c   : > { %v352_v0 = vmul.f32 0.1, %v320_v59  ;;  %v353_v1 = vmul.f32 0.1, %v321_v36  ;;  %v354_v2 = vmul.f32 0.1, %v322_v60  ;;  %v300_v8 = vmul.f32 %v290_v52, %v270_v53 }
 0x14d   : > { %v355_v9 = vmul.f32 0.1, %v323_v61  ;;  %v356_v10 = vmul.f32 0.1, %v324_v39  ;;  %v357_v11 = vmul.f32 0.1, %v325_v62  ;;  %v301_v12 = vmul.f32 %v290_v52, %v271_v3  ;;  %v318_v27 = vpop.permute.xlu1 %317 }
 0x14e   : > { %v358_v13 = vmul.f32 0.1, %v326_v63  ;;  %v359_v14 = vmul.f32 0.1, %v327_v46  ;;  %v368_v16 = vsel %vm336_vm0, %v320_v59, %v352_v0  ;;  %v369_v17 = vsel %vm337_vm1, %v321_v36, %v353_v1 }
 0x14f   : > { %v370_v18 = vsel %vm338_vm2, %v322_v60, %v354_v2  ;;  %v371_v22 = vsel %vm339_vm3, %v323_v61, %v355_v9  ;;  %v372_v25 = vsel %vm340_vm4, %v324_v39, %v356_v10  ;;  %v373_v26 = vsel %vm341_vm5, %v325_v62, %v357_v11  ;;  %384 = vst [vmem:[%s660_s29] sm:$0xff] %v368_v16 }
 0x150   : > { %385 = vst [vmem:[%s660_s29 + $0x8] sm:$0xff] %v369_v17  ;;  %v374_v29 = vsel %vm342_vm6, %v326_v63, %v358_v13  ;;  %v375_v30 = vsel %vm343_vm7, %v327_v46, %v359_v14  ;;  %386 = vst [vmem:[%s660_s29 + $0x10] sm:$0xff] %v370_v18  ;;  %v302_v31 = vmul.f32 %v290_v52, %v272_v4 }
 0x151   : > { %387 = vst [vmem:[%s660_s29 + $0x18] sm:$0xff] %v371_v22  ;;  %388 = vst [vmem:[%s660_s29 + $0x20] sm:$0xff] %v372_v25  ;;  %v303_v32 = vmul.f32 %v290_v52, %v273_v5  ;;  %v304_v33 = vmul.f32 %v290_v52, %v274_v15  ;;  %v305_v34 = vmul.f32 %v290_v52, %v275_v20 }
 0x152   : > { %389 = vst [vmem:[%s660_s29 + $0x28] sm:$0xff] %v373_v26  ;;  %390 = vst [vmem:[%s660_s29 + $0x30] sm:$0xff] %v374_v29  ;;  %v306_v35 = vmul.f32 %v290_v52, %v276_v19  ;;  %v307_v37 = vmul.f32 %v290_v52, %v277_v21  ;;  %v328_v38 = vadd.f32 %v318_v27, %v300_v8 }
 0x153   : > { %391 = vst [vmem:[%s660_s29 + $0x38] sm:$0xff] %v375_v30  ;;  %v329_v40 = vadd.f32 %v318_v27, %v301_v12  ;;  %v330_v41 = vadd.f32 %v318_v27, %v302_v31  ;;  %v331_v42 = vadd.f32 %v318_v27, %v303_v32  ;;  %v332_v43 = vadd.f32 %v318_v27, %v304_v33 }
 0x154   : > { %v333_v44 = vadd.f32 %v318_v27, %v305_v34  ;;  %v334_v45 = vadd.f32 %v318_v27, %v306_v35  ;;  %v335_v47 = vadd.f32 %v318_v27, %v307_v37  ;;  %vm344_vm8 = vcmp.ge.f32.partialorder %v328_v38, 0.0 }
 0x155   : > { %vm345_vm9 = vcmp.ge.f32.partialorder %v329_v40, 0.0  ;;  %vm346_vm10 = vcmp.ge.f32.partialorder %v330_v41, 0.0  ;;  %vm347_vm11 = vcmp.ge.f32.partialorder %v331_v42, 0.0  ;;  %vm348_vm12 = vcmp.ge.f32.partialorder %v332_v43, 0.0 }
 0x156   : > { %vm349_vm13 = vcmp.ge.f32.partialorder %v333_v44, 0.0  ;;  %vm350_vm14 = vcmp.ge.f32.partialorder %v334_v45, 0.0  ;;  %vm351_vm15 = vcmp.ge.f32.partialorder %v335_v47, 0.0  ;;  %v360_v48 = vmul.f32 0.1, %v328_v38 }
 0x157   : > { %v361_v49 = vmul.f32 0.1, %v329_v40  ;;  %v362_v50 = vmul.f32 0.1, %v330_v41  ;;  %v363_v51 = vmul.f32 0.1, %v331_v42 }
 0x158   : > { %v364_v53 = vmul.f32 0.1, %v332_v43  ;;  %v365_v3 = vmul.f32 0.1, %v333_v44  ;;  %v366_v4 = vmul.f32 0.1, %v334_v45  ;;  %v376_v6 = vsel %vm344_vm8, %v328_v38, %v360_v48 }
 0x159   : > { %v367_v5 = vmul.f32 0.1, %v335_v47  ;;  %v377_v7 = vsel %vm345_vm9, %v329_v40, %v361_v49  ;;  %v378_v15 = vsel %vm346_vm10, %v330_v41, %v362_v50  ;;  %v379_v20 = vsel %vm347_vm11, %v331_v42, %v363_v51  ;;  %392 = vst [vmem:[%s660_s29 + $0x40] sm:$0xff] %v376_v6 }
 0x15a   : > { %v380_v19 = vsel %vm348_vm12, %v332_v43, %v364_v53  ;;  %v381_v21 = vsel %vm349_vm13, %v333_v44, %v365_v3  ;;  %393 = vst [vmem:[%s660_s29 + $0x48] sm:$0xff] %v377_v7  ;;  %v382_v23 = vsel %vm350_vm14, %v334_v45, %v366_v4  ;;  %394 = vst [vmem:[%s660_s29 + $0x50] sm:$0xff] %v378_v15 }
 0x15b   : > { %v383_v24 = vsel %vm351_vm15, %v335_v47, %v367_v5  ;;  %395 = vst [vmem:[%s660_s29 + $0x58] sm:$0xff] %v379_v20  ;;  %396 = vst [vmem:[%s660_s29 + $0x60] sm:$0xff] %v380_v19 }
 0x15c   : > { %397 = vst [vmem:[%s660_s29 + $0x68] sm:$0xff] %v381_v21  ;;  %398 = vst [vmem:[%s660_s29 + $0x70] sm:$0xff] %v382_v23 }
 0x15d   : > { %399 = vst [vmem:[%s660_s29 + $0x78] sm:$0xff] %v383_v24 }
 0x15e PF: > { %s13_s12 = sadd.s32 1, %s489_s12  }
 0x15f   : > { %p10_p4 = scmp.ge.s32.totalorder %s13_s12, 4  }
 0x161   :  { %12 = sbr.rel (!%p10_p4) target bundleno = 1 (0x1), region = 62 }

// kernel: decoder_block_forward.6
= control target key start
LH: loop header
LB: loop body
LE: loop exit
PB: predicated region body
PF: predicated region fallthrough
CT: control target
= control target key end

     0   :  { %s952_s9 = smov 0   ;;  %s954_s10 = smov 0   ;;  %s1172_s0 = inlined_call_operand.vmem [shape: bf16[16,144], index: 0, kind: input, shape index: {}]   ;;  %s1173_s1 = inlined_call_operand.vmem [shape: bf16[2,144,1024], index: 1, kind: input, shape index: {}]   ;;  %s1174_s2 = inlined_call_operand.vmem [shape: bf16[2,16,1024], index: 2, kind: output, shape index: {}]  }
   0x1   :  { %s956_s11 = smov 0   ;;  %s958_s12 = smov 0  }
   0x2   :  { %s960_s13 = smov 0   ;;  %s962_s14 = smov 0  }
   0x3   :  { %s964_s15 = smov 0  }
   0x4 LB: > { %s21_s16 = sadd.s32 1, %s927_s13  ;;  %s24_s17 = sadd.s32 1, %s931_s14  ;;  %s935_s15 = sphi %s964_s15, %s12_s15   ;;  %s931_s14 = sphi %s962_s14, %s1181_s14   ;;  %s927_s13 = sphi %s960_s13, %s1180_s13   ;;  %s923_s12 = sphi %s958_s12, %s1179_s12   ;;  %s919_s11 = sphi %s956_s11, %s1178_s11   ;;  %s915_s10 = sphi %s954_s10, %s1177_s10   ;;  %s911_s9 = sphi %s952_s9, %s1176_s9  }
   0x5   : > { %p22_p0 = scmp.ge.s32.totalorder %s21_s16, 2  ;;  %s703_s18 = sadd.s32 4294967295, %s935_s15  }
   0x6   : > { %p61_p1 = scmp.ne.s32.totalorder %s915_s10, %s911_s9  ;;  %p62_p2 = scmp.eq.s32.totalorder %s935_s15, 0 }
   0x7   : > { %s1183_s16 = smov (%p22_p0, %s21_s16), 0  ;;  %s1185_s17 = smov (!%p22_p0, %s24_s17), %s931_s14 }
   0x8   : > { %p26_p3 = scmp.ge.s32.totalorder %s1185_s17, 2  ;;  %p93_p4 = scmp.eq.s32.totalorder %s703_s18, 3 }
   0x9   : > { %s50_s19 = ssub.s32 %s927_s13, %s1183_s16  ;;  %p63_p5 = por %p62_p2, %p61_p1 }
   0xa   : > { %s1187_s17 = smov (%p26_p3, %s1185_s17), 0  ;;  %p1000_p6 = por %p93_p4, %p61_p1 }
   0xb   : > { %s49_s21 = ssub.s32 %s931_s14, %s1187_s17  ;;  %s54_s23 = sadd.s32 1, %s915_s10 }
   0xc   : > { %s51_s22 = sor.u32 %s50_s19, %s49_s21  ;;  %p706_p8 = scmp.ge.s32.totalorder %s935_s15, 4 }
   0xd   : > { %p52_p7 = scmp.eq.s32.totalorder %s51_s22, 0 }
   0xe   : > { %118 = sbr.rel (%p706_p8) target bundleno = 47 (0x2f), region = 20 }
   0xf   : > { %s1008_s24 = scalar_select %p52_p7, %s915_s10, %s54_s23  }
  0x15   : > { %121 = sbr.rel (!%p63_p5) target bundleno = 47 (0x2f), region = 24  ;;  %s123_s25 = sand.u32 (%p63_p5), 1, %s915_s10  }
  0x16   : > { %s765_s26 = smul.u32 (%p63_p5), 288, %s123_s25  ;;  %s707_s27 = sshll.u32 (%p63_p5), %s927_s13, 2 }
  0x17   : > { %s766_s28 = smul.u32 (%p63_p5), 144, %s931_s14 }
  0x18   : > { %s1022_s6 = scalar_lea.vmem (%p63_p5), [#allocation2], %s765_s26 }
  0x19   : > { %s128_s29 = sadd.s32 (%p63_p5), %s766_s28, %s707_s27 }
  0x1a   : > { %s708_s30 = sshll.u32 (%p63_p5), %s128_s29, 2 }
  0x1b   : > { %s1017_s5 = scalar_lea.vmem (%p63_p5), %s1173_s1, %s708_s30 }
  0x1c   : > { %v143_v0 = vld [vmem:[%s1017_s5] sm:$0xff]  ;;  %v145_v1 = vld [vmem:[%s1017_s5 + $0x8] sm:$0xff] }
  0x1d   : > { %v147_v2 = vld [vmem:[%s1017_s5 + $0x20] sm:$0xff]  ;;  %144 = vst [vmem:[%s1022_s6] sm:$0xff] %v143_v0  ;;  %146 = vst [vmem:[%s1022_s6 + $0x8] sm:$0xff] %v145_v1  ;;  %v149_v3 = vld [vmem:[%s1017_s5 + $0x28] sm:$0xff] }
  0x1e   : > { %148 = vst [vmem:[%s1022_s6 + $0x10] sm:$0xff] %v147_v2  ;;  %v151_v4 = vld [vmem:[%s1017_s5 + $0x40] sm:$0xff]  ;;  %v153_v5 = vld [vmem:[%s1017_s5 + $0x48] sm:$0xff]  ;;  %150 = vst [vmem:[%s1022_s6 + $0x18] sm:$0xff] %v149_v3 }
  0x1f   : > { %152 = vst [vmem:[%s1022_s6 + $0x20] sm:$0xff] %v151_v4  ;;  %154 = vst [vmem:[%s1022_s6 + $0x28] sm:$0xff] %v153_v5  ;;  %v155_v6 = vld [vmem:[%s1017_s5 + $0x60] sm:$0xff]  ;;  %v157_v7 = vld [vmem:[%s1017_s5 + $0x68] sm:$0xff] }
  0x20   : > { %v159_v8 = vld [vmem:[%s1017_s5 + $0x80] sm:$0xff]  ;;  %156 = vst [vmem:[%s1022_s6 + $0x30] sm:$0xff] %v155_v6  ;;  %158 = vst [vmem:[%s1022_s6 + $0x38] sm:$0xff] %v157_v7  ;;  %v161_v9 = vld [vmem:[%s1017_s5 + $0x88] sm:$0xff] }
  0x21   : > { %160 = vst [vmem:[%s1022_s6 + $0x40] sm:$0xff] %v159_v8  ;;  %v163_v10 = vld [vmem:[%s1017_s5 + $0xa0] sm:$0xff]  ;;  %v165_v11 = vld [vmem:[%s1017_s5 + $0xa8] sm:$0xff]  ;;  %162 = vst [vmem:[%s1022_s6 + $0x48] sm:$0xff] %v161_v9 }
  0x22   : > { %164 = vst [vmem:[%s1022_s6 + $0x50] sm:$0xff] %v163_v10  ;;  %166 = vst [vmem:[%s1022_s6 + $0x58] sm:$0xff] %v165_v11  ;;  %v167_v12 = vld [vmem:[%s1017_s5 + $0xc0] sm:$0xff]  ;;  %v169_v13 = vld [vmem:[%s1017_s5 + $0xc8] sm:$0xff] }
  0x23   : > { %v171_v14 = vld [vmem:[%s1017_s5 + $0xe0] sm:$0xff]  ;;  %168 = vst [vmem:[%s1022_s6 + $0x60] sm:$0xff] %v167_v12  ;;  %170 = vst [vmem:[%s1022_s6 + $0x68] sm:$0xff] %v169_v13  ;;  %v173_v15 = vld [vmem:[%s1017_s5 + $0xe8] sm:$0xff] }
  0x24   : > { %172 = vst [vmem:[%s1022_s6 + $0x70] sm:$0xff] %v171_v14  ;;  %v175_v16 = vld [vmem:[%s1017_s5 + $0x100] sm:$0xff]  ;;  %v177_v17 = vld [vmem:[%s1017_s5 + $0x108] sm:$0xff]  ;;  %174 = vst [vmem:[%s1022_s6 + $0x78] sm:$0xff] %v173_v15 }
  0x25   : > { %176 = vst [vmem:[%s1022_s6 + $0x80] sm:$0xff] %v175_v16  ;;  %178 = vst [vmem:[%s1022_s6 + $0x88] sm:$0xff] %v177_v17  ;;  %v179_v18 = vld [vmem:[%s1017_s5 + $0x120] sm:$0xff]  ;;  %v181_v19 = vld [vmem:[%s1017_s5 + $0x128] sm:$0xff] }
  0x26   : > { %v183_v20 = vld [vmem:[%s1017_s5 + $0x140] sm:$0xff]  ;;  %180 = vst [vmem:[%s1022_s6 + $0x90] sm:$0xff] %v179_v18  ;;  %182 = vst [vmem:[%s1022_s6 + $0x98] sm:$0xff] %v181_v19  ;;  %v185_v21 = vld [vmem:[%s1017_s5 + $0x148] sm:$0xff] }
  0x27   : > { %184 = vst [vmem:[%s1022_s6 + $0xa0] sm:$0xff] %v183_v20  ;;  %v187_v22 = vld [vmem:[%s1017_s5 + $0x160] sm:$0xff]  ;;  %v189_v23 = vld [vmem:[%s1017_s5 + $0x168] sm:$0xff]  ;;  %186 = vst [vmem:[%s1022_s6 + $0xa8] sm:$0xff] %v185_v21 }
  0x28   : > { %188 = vst [vmem:[%s1022_s6 + $0xb0] sm:$0xff] %v187_v22  ;;  %190 = vst [vmem:[%s1022_s6 + $0xb8] sm:$0xff] %v189_v23  ;;  %v191_v24 = vld [vmem:[%s1017_s5 + $0x180] sm:$0xff]  ;;  %v193_v25 = vld [vmem:[%s1017_s5 + $0x188] sm:$0xff] }
  0x29   : > { %v195_v26 = vld [vmem:[%s1017_s5 + $0x1a0] sm:$0xff]  ;;  %192 = vst [vmem:[%s1022_s6 + $0xc0] sm:$0xff] %v191_v24  ;;  %194 = vst [vmem:[%s1022_s6 + $0xc8] sm:$0xff] %v193_v25  ;;  %v197_v27 = vld [vmem:[%s1017_s5 + $0x1a8] sm:$0xff] }
  0x2a   : > { %196 = vst [vmem:[%s1022_s6 + $0xd0] sm:$0xff] %v195_v26  ;;  %v199_v28 = vld [vmem:[%s1017_s5 + $0x1c0] sm:$0xff]  ;;  %v201_v29 = vld [vmem:[%s1017_s5 + $0x1c8] sm:$0xff]  ;;  %198 = vst [vmem:[%s1022_s6 + $0xd8] sm:$0xff] %v197_v27 }
  0x2b   : > { %200 = vst [vmem:[%s1022_s6 + $0xe0] sm:$0xff] %v199_v28  ;;  %202 = vst [vmem:[%s1022_s6 + $0xe8] sm:$0xff] %v201_v29  ;;  %v203_v30 = vld [vmem:[%s1017_s5 + $0x1e0] sm:$0xff]  ;;  %v205_v31 = vld [vmem:[%s1017_s5 + $0x1e8] sm:$0xff] }
  0x2c   : > { %v207_v32 = vld [vmem:[%s1017_s5 + $0x200] sm:$0xff]  ;;  %204 = vst [vmem:[%s1022_s6 + $0xf0] sm:$0xff] %v203_v30  ;;  %206 = vst [vmem:[%s1022_s6 + $0xf8] sm:$0xff] %v205_v31  ;;  %v209_v33 = vld [vmem:[%s1017_s5 + $0x208] sm:$0xff] }
  0x2d   : > { %208 = vst [vmem:[%s1022_s6 + $0x100] sm:$0xff] %v207_v32  ;;  %v211_v34 = vld [vmem:[%s1017_s5 + $0x220] sm:$0xff]  ;;  %v213_v35 = vld [vmem:[%s1017_s5 + $0x228] sm:$0xff]  ;;  %210 = vst [vmem:[%s1022_s6 + $0x108] sm:$0xff] %v209_v33 }
  0x2e   : > { %212 = vst [vmem:[%s1022_s6 + $0x110] sm:$0xff] %v211_v34  ;;  %214 = vst [vmem:[%s1022_s6 + $0x118] sm:$0xff] %v213_v35 }
  0x2f PF: > { %p709_p9 = scmp.ge.s32.totalorder %s935_s15, 1  ;;  %p219_p10 = scmp.lt.s32.totalorder %s935_s15, 5 }
  0x31   : > { %p220_p11 = pnand %p709_p9, %p219_p10 }
  0x32   : > { %s226_s7 = sand.u32 (!%p220_p11), 1, %s911_s9   ;;  %vm476_vm0 = vcmask (!%p220_p11), 130048   ;;  %v880_v36 = vld [vmem:[%s1172_s0 + $0x4] ss:$8 sps:$4 sm:$0xff] (!%p220_p11)   ;;  %v878_v9 = vld [vmem:[%s1172_s0] ss:$8 sps:$4 sm:$0xff] (!%p220_p11)  }
  0x33   : > { %223 = sbr.rel (%p220_p11) target bundleno = 318 (0x13e), region = 47  ;;  %749 = vmatprep.mubr.msk.bf16.mxu0 (!%p220_p11), %vm476_vm0, %v880_v36  ;;  %750 = vmatprep.mubr.msk.bf16.mxu1 (!%p220_p11), %vm476_vm0, %v880_v36  ;;  %s710_s25 = sshll.u32 (!%p220_p11), %s226_s7, 5 }
  0x34   : > { %s767_s8 = smul.u32 (!%p220_p11), 288, %s226_s7  ;;  %s245_s26 = scalar_lea.vmem (!%p220_p11), [#allocation3], %s710_s25 }
  0x36   : > { %s1101_s21 = scalar_lea.vmem (!%p220_p11), [#allocation2], %s767_s8 }
  0x37   : > { %v824_v37 = vld [vmem:[%s1101_s21 + $0x4] ss:$16 sps:$4 sm:$0xff] (!%p220_p11)   ;;  %v826_v38 = vld [vmem:[%s1101_s21 + $0xc] ss:$16 sps:$4 sm:$0xff] (!%p220_p11)   ;;  %v828_v39 = vld [vmem:[%s1101_s21] ss:$16 sps:$4 sm:$0xff] (!%p220_p11)  }
  0x38   : > { %480 = vmatprep.subr.bf16.mxu0 (!%p220_p11), %v824_v37  ;;  %v829_v40 = vld [vmem:[%s1101_s21 + $0x8] ss:$16 sps:$4 sm:$0xff] (!%p220_p11)   ;;  %523 = vmatprep.subr.bf16.mxu1 (!%p220_p11), %v826_v38  ;;  %v830_v41 = vld [vmem:[%s1101_s21 + $0x24] ss:$16 sps:$4 sm:$0xff] (!%p220_p11)   ;;  %v832_v42 = vld [vmem:[%s1101_s21 + $0x2c] ss:$16 sps:$4 sm:$0xff] (!%p220_p11)  }
  0x39   : > { %481 = vmatpush1.bf16.msra.mxu0 (!%p220_p11), %v828_v39  ;;  %524 = vmatpush1.bf16.msra.mxu1 (!%p220_p11), %v829_v40  ;;  %v834_v43 = vld [vmem:[%s1101_s21 + $0x20] ss:$16 sps:$4 sm:$0xff] (!%p220_p11)   ;;  %v835_v44 = vld [vmem:[%s1101_s21 + $0x28] ss:$16 sps:$4 sm:$0xff] (!%p220_p11)   ;;  %v836_v45 = vld [vmem:[%s1101_s21 + $0x44] ss:$16 sps:$4 sm:$0xff] (!%p220_p11)  }
  0x3a   : > { %482 = vmatprep.subr.bf16.mxu0 %v830_v41  ;;  %525 = vmatprep.subr.bf16.mxu1 %v832_v42  ;;  %v838_v46 = vld [vmem:[%s1101_s21 + $0x4c] ss:$16 sps:$4 sm:$0xff]   ;;  %v840_v47 = vld [vmem:[%s1101_s21 + $0x40] ss:$16 sps:$4 sm:$0xff]   ;;  %v841_v48 = vld [vmem:[%s1101_s21 + $0x48] ss:$16 sps:$4 sm:$0xff]  }
  0x3b   : > { %v842_v49 = vld [vmem:[%s1101_s21 + $0x64] ss:$16 sps:$4 sm:$0xff]   ;;  %v844_v50 = vld [vmem:[%s1101_s21 + $0x6c] ss:$16 sps:$4 sm:$0xff]   ;;  %v846_v51 = vld [vmem:[%s1101_s21 + $0x60] ss:$16 sps:$4 sm:$0xff]  }
  0x3c   : > { %v847_v52 = vld [vmem:[%s1101_s21 + $0x68] ss:$16 sps:$4 sm:$0xff]   ;;  %v848_v53 = vld [vmem:[%s1101_s21 + $0x84] ss:$16 sps:$4 sm:$0xff]   ;;  %v850_v54 = vld [vmem:[%s1101_s21 + $0x8c] ss:$16 sps:$4 sm:$0xff]  }
  0x3d   : > { %483 = vmatpush1.bf16.msra.mxu0 %v834_v43  ;;  %526 = vmatpush1.bf16.msra.mxu1 %v835_v44  ;;  %v852_v55 = vld [vmem:[%s1101_s21 + $0x80] ss:$16 sps:$4 sm:$0xff]   ;;  %v853_v56 = vld [vmem:[%s1101_s21 + $0x88] ss:$16 sps:$4 sm:$0xff]   ;;  %v854_v57 = vld [vmem:[%s1101_s21 + $0xa4] ss:$16 sps:$4 sm:$0xff]  }
  0x3e   : > { %484 = vmatprep.subr.bf16.mxu0 %v836_v45  ;;  %527 = vmatprep.subr.bf16.mxu1 %v838_v46  ;;  %v856_v58 = vld [vmem:[%s1101_s21 + $0xac] ss:$16 sps:$4 sm:$0xff]   ;;  %v858_v59 = vld [vmem:[%s1101_s21 + $0xa0] ss:$16 sps:$4 sm:$0xff]   ;;  %v859_v60 = vld [vmem:[%s1101_s21 + $0xa8] ss:$16 sps:$4 sm:$0xff]  }
  0x3f   : > { %v860_v61 = vld [vmem:[%s1101_s21 + $0xc4] ss:$16 sps:$4 sm:$0xff]   ;;  %v862_v62 = vld [vmem:[%s1101_s21 + $0xcc] ss:$16 sps:$4 sm:$0xff]   ;;  %v864_v63 = vld [vmem:[%s1101_s21 + $0xc0] ss:$16 sps:$4 sm:$0xff]  }
  0x40   : > { %v865_v0 = vld [vmem:[%s1101_s21 + $0xc8] ss:$16 sps:$4 sm:$0xff]   ;;  %v866_v1 = vld [vmem:[%s1101_s21 + $0xe4] ss:$16 sps:$4 sm:$0xff]   ;;  %v868_v2 = vld [vmem:[%s1101_s21 + $0xec] ss:$16 sps:$4 sm:$0xff]  }
  0x41   : > { %485 = vmatpush1.bf16.msra.mxu0 %v840_v47  ;;  %528 = vmatpush1.bf16.msra.mxu1 %v841_v48  ;;  %v870_v3 = vld [vmem:[%s1101_s21 + $0xe0] ss:$16 sps:$4 sm:$0xff]   ;;  %v871_v4 = vld [vmem:[%s1101_s21 + $0xe8] ss:$16 sps:$4 sm:$0xff]   ;;  %v872_v5 = vld [vmem:[%s1101_s21 + $0x104] ss:$16 sps:$4 sm:$0xff]  }
  0x42   : > { %486 = vmatprep.subr.bf16.mxu0 %v842_v49  ;;  %529 = vmatprep.subr.bf16.mxu1 %v844_v50  ;;  %v874_v6 = vld [vmem:[%s1101_s21 + $0x10c] ss:$16 sps:$4 sm:$0xff]   ;;  %v876_v7 = vld [vmem:[%s1101_s21 + $0x100] ss:$16 sps:$4 sm:$0xff]   ;;  %v877_v8 = vld [vmem:[%s1101_s21 + $0x108] ss:$16 sps:$4 sm:$0xff]  }
  0x43   : > { %s756_s9 = sshll.u32 (%p1000_p6), %s919_s11, 2  ;;  %s757_s27 = sshll.u32 (%p1000_p6), %s923_s12, 4 }
  0x44   : > { %s603_s28 = sadd.s32 (%p1000_p6), %s757_s27, %s756_s9 }
  0x45   : > { %487 = vmatpush1.bf16.msra.mxu0 %v846_v51  ;;  %530 = vmatpush1.bf16.msra.mxu1 %v847_v52  ;;  %s758_s29 = sshll.u32 (%p1000_p6), %s603_s28, 2 }
  0x46   : > { %488 = vmatprep.subr.bf16.mxu0 %v848_v53  ;;  %531 = vmatprep.subr.bf16.mxu1 %v850_v54  ;;  %s605_s4 = scalar_lea.vmem (%p1000_p6), %s1174_s2, %s758_s29 }
  0x49   : > { %489 = vmatpush1.bf16.msra.mxu0 %v852_v55  ;;  %532 = vmatpush1.bf16.msra.mxu1 %v853_v56 }
  0x4a   : > { %490 = vmatprep.subr.bf16.mxu0 %v854_v57  ;;  %533 = vmatprep.subr.bf16.mxu1 %v856_v58 }
  0x4d   : > { %491 = vmatpush1.bf16.msra.mxu0 %v858_v59  ;;  %534 = vmatpush1.bf16.msra.mxu1 %v859_v60 }
  0x4e   : > { %492 = vmatprep.subr.bf16.mxu0 %v860_v61  ;;  %535 = vmatprep.subr.bf16.mxu1 %v862_v62 }
  0x51   : > { %493 = vmatpush1.bf16.msra.mxu0 %v864_v63  ;;  %536 = vmatpush1.bf16.msra.mxu1 %v865_v0 }
  0x52   : > { %494 = vmatprep.subr.bf16.mxu0 %v866_v1  ;;  %537 = vmatprep.subr.bf16.mxu1 %v868_v2 }
  0x55   : > { %495 = vmatpush1.bf16.msra.mxu0 %v870_v3  ;;  %538 = vmatpush1.bf16.msra.mxu1 %v871_v4 }
  0x56   : > { %496 = vmatprep.subr.bf16.mxu0 %v872_v5  ;;  %539 = vmatprep.subr.bf16.mxu1 %v874_v6 }
  0x59   : > { %497 = vmatpush1.bf16.msra.mxu0 %v876_v7  ;;  %540 = vmatpush1.bf16.msra.mxu1 %v877_v8 }
  0x5c   : > { %513 = vmatmul.mubr.bf16.vlgmr.msra.gmra.mrb[0].mxu0 %v878_v9  ;;  %556 = vmatmul.mubr.bf16.vlgmr.msra.gmra.mrb[0].mxu1 %v878_v9 }
 0x12f   : > { %v514_v10 = vpop.f32.mrb[0].mxu0  ;;  %v557_v11 = vpop.f32.mrb[0].mxu1  ;;  %600 = sbr.rel (!%p1000_p6) target bundleno = 318 (0x13e), region = 55 }
 0x130   : > { %v516_v12 = vpop.f32.mrb[1].mxu0  ;;  %v559_v13 = vpop.f32.mrb[1].mxu1 }
 0x131   : > { %v761_v14 = vpack.c.bf16 %v516_v12, %v514_v10  ;;  %v762_v15 = vpack.c.bf16 %v559_v13, %v557_v11  ;;  %v518_v16 = vpop.f32.mrb[2].mxu0  ;;  %v561_v17 = vpop.f32.mrb[2].mxu1 }
 0x132   : > { %v520_v18 = vpop.f32.mrb[3].mxu0  ;;  %v563_v19 = vpop.f32.mrb[3].mxu1 }
 0x133   : > { %590 = vst [vmem:[%s245_s26] sm:$0xff] %v761_v14  ;;  %591 = vst [vmem:[%s245_s26 + $0x8] sm:$0xff] %v762_v15  ;;  %v763_v20 = vpack.c.bf16 %v520_v18, %v518_v16  ;;  %v764_v21 = vpack.c.bf16 %v563_v19, %v561_v17 }
 0x135   : > { %592 = vst [vmem:[%s245_s26 + $0x10] sm:$0xff] %v763_v20  ;;  %593 = vst [vmem:[%s245_s26 + $0x18] sm:$0xff] %v764_v21 }
 0x13a   : > { %v618_v22 = vld [vmem:[%s245_s26] sm:$0xff]  ;;  %v620_v23 = vld [vmem:[%s245_s26 + $0x8] sm:$0xff] }
 0x13b   : > { %619 = vst [vmem:[%s605_s4] sm:$0xff] %v618_v22  ;;  %621 = vst [vmem:[%s605_s4 + $0x8] sm:$0xff] %v620_v23 }
 0x13c   : > { %v622_v24 = vld [vmem:[%s245_s26 + $0x10] sm:$0xff]  ;;  %v624_v25 = vld [vmem:[%s245_s26 + $0x18] sm:$0xff] }
 0x13d   : > { %623 = vst [vmem:[%s605_s4 + $0x20] sm:$0xff] %v622_v24  ;;  %625 = vst [vmem:[%s605_s4 + $0x28] sm:$0xff] %v624_v25 }
 0x13e PF: > { %s12_s15 = sadd.s32 1, %s935_s15   ;;  %s1176_s9 = smov %s915_s10 }
 0x13f   : > { %p9_p12 = scmp.ge.s32.totalorder %s12_s15, 6   ;;  %s1177_s10 = smov %s1008_s24 }
 0x140   : > { %s1178_s11 = smov %s927_s13  ;;  %s1179_s12 = smov %s931_s14 }
 0x141   : > { %s1180_s13 = smov %s1183_s16  ;;  %s1181_s14 = smov %s1187_s17 }
 0x142   :  { %11 = sbr.rel (!%p9_p12) target bundleno = 4 (0x4), region = 109 }

</bundles_post_ra>
